<compile_context>
chip_gen: v7x
topology: tpu7x:2x2x1
jax: 0.10.0
libtpu: 0.0.40
codegen_flags: <defaults>
</compile_context>

<pallas_src>
import functools
import math

import jax
import jax.numpy as jnp
from jax.experimental import pallas as pl
from jax.experimental.pallas import tpu as pltpu


# ----------------------------------------------------------------------------
# Fused multi-layer LSTM + final ReLU kernel (single grid step).
#
# refs = (x_ref, w_0, b_0, ..., w_{L-1}, b_{L-1}, out_ref, mid_ref)
#   x_ref   : (T, B, I)          time-major input
#   w_l     : (I_l + H, 4H)      stacked [W_ih^T ; W_hh^T], gate order (i,f,g,o)
#   b_l     : (1, 4H)            combined bias (b_ih + b_hh)
#   out_ref : (T, B, H)          relu(h_t) of the last layer
#   mid_ref : (T, B, H) f32      VMEM scratch holding intermediate layer outputs
# ----------------------------------------------------------------------------
def encoder_lstm_kernel(*refs, num_layers):
    x_ref = refs[0]
    w_refs = [refs[1 + 2 * l] for l in range(num_layers)]
    b_refs = [refs[2 + 2 * l] for l in range(num_layers)]
    out_ref = refs[1 + 2 * num_layers]
    mid_ref = refs[2 + 2 * num_layers]

    T, B, _ = x_ref.shape
    H = out_ref.shape[-1]

    for layer in range(num_layers):
        last = layer == num_layers - 1
        src_ref = x_ref if layer == 0 else mid_ref
        dst_ref = out_ref if last else mid_ref

        # Hoist the (VMEM-resident) weight/bias loads out of the time loop.
        w = w_refs[layer][...].astype(jnp.float32)   # (I_l + H, 4H)
        b = b_refs[layer][...].astype(jnp.float32)   # (1, 4H)

        def body(t, carry, src_ref=src_ref, dst_ref=dst_ref, w=w, b=b, last=last):
            h, c = carry
            x_t = src_ref[t].astype(jnp.float32)            # (B, I_l)
            xh = jnp.concatenate([x_t, h], axis=-1)         # (B, I_l + H)
            # One fused MXU matmul for all four gates of both weight blocks.
            gates = jnp.dot(xh, w, preferred_element_type=jnp.float32) + b
            # TODO(synk): for large H, reorder gate columns to a lane-aligned
            # per-gate layout (avoids sub-vreg slicing); negligible at H=32.
            i_g = jax.nn.sigmoid(gates[:, 0 * H:1 * H])
            f_g = jax.nn.sigmoid(gates[:, 1 * H:2 * H])
            g_g = jnp.tanh(gates[:, 2 * H:3 * H])
            o_g = jax.nn.sigmoid(gates[:, 3 * H:4 * H])
            c_new = f_g * c + i_g * g_g
            h_new = o_g * jnp.tanh(c_new)
            out = jnp.maximum(h_new, 0.0) if last else h_new
            dst_ref[t] = out.astype(dst_ref.dtype)
            return (h_new, c_new)

        init = (jnp.zeros((B, H), jnp.float32), jnp.zeros((B, H), jnp.float32))
        jax.lax.fori_loop(0, T, body, init, unroll=True)


def lstm_encoder_pallas(params, x_tbi):
    """Run the full (stacked-layer) LSTM + ReLU on a time-major [T, B, I] input."""
    T, B, I = x_tbi.shape
    L = len(params)
    H = params[0]["w"].shape[1] // 4

    kernel = functools.partial(encoder_lstm_kernel, num_layers=L)

    in_arrays = [x_tbi]
    in_specs = [pl.BlockSpec((T, B, I), lambda i: (0, 0, 0))]
    for p in params:
        k = p["w"].shape[0]
        in_arrays += [p["w"], p["b"]]
        in_specs += [
            pl.BlockSpec((k, 4 * H), lambda i: (0, 0)),
            pl.BlockSpec((1, 4 * H), lambda i: (0, 0)),
        ]

    return pl.pallas_call(
        kernel,
        out_shape=jax.ShapeDtypeStruct((T, B, H), x_tbi.dtype),
        grid_spec=pltpu.PrefetchScalarGridSpec(
            num_scalar_prefetch=0,
            grid=(1,),                      # single invocation; recurrence is in-kernel
            in_specs=in_specs,
            out_specs=pl.BlockSpec((T, B, H), lambda i: (0, 0, 0)),
            scratch_shapes=[pltpu.VMEM((T, B, H), jnp.float32)],  # inter-layer acts
        ),
        compiler_params=pltpu.CompilerParams(
            dimension_semantics=("arbitrary",),
        ),
    )(*in_arrays)


# ----------------------------------------------------------------------------
# Parameter construction (deterministic, mirrors the PyTorch module __init__).
# ----------------------------------------------------------------------------
def xavier_uniform(key, shape, gain):
    # PyTorch xavier_uniform_ on 2D (out, in): fan_in = shape[1], fan_out = shape[0]
    fan_out, fan_in = shape
    bound = gain * math.sqrt(6.0 / (fan_in + fan_out))
    return jax.random.uniform(key, shape, jnp.float32, -bound, bound)


def make_encoder_params(key, input_size, hidden_size, num_layers,
                        bidirectional=False):
    if bidirectional:
        # TODO(synk): bidirectional LSTM (reverse pass + concat) not implemented.
        raise NotImplementedError
    H = hidden_size
    params = []
    for layer in range(num_layers):
        I = input_size if layer == 0 else H
        key, k1, k2, k3, k4 = jax.random.split(key, 5)
        if layer == 0:
            # module applies xavier_uniform(gain=sqrt(2)) to layer-0 weights only
            w_ih = xavier_uniform(k1, (4 * H, I), gain=math.sqrt(2.0))
            w_hh = xavier_uniform(k2, (4 * H, H), gain=math.sqrt(2.0))
        else:
            bound = 1.0 / math.sqrt(H)  # PyTorch default LSTM init
            w_ih = jax.random.uniform(k1, (4 * H, I), jnp.float32, -bound, bound)
            w_hh = jax.random.uniform(k2, (4 * H, H), jnp.float32, -bound, bound)
        bound = 1.0 / math.sqrt(H)
        b_ih = jax.random.uniform(k3, (4 * H,), jnp.float32, -bound, bound)
        b_hh = jax.random.uniform(k4, (4 * H,), jnp.float32, -bound, bound)
        params.append(
            dict(
                # stacked [W_ih^T ; W_hh^T] so the kernel needs one matmul/step
                w=jnp.concatenate([jnp.transpose(w_ih), jnp.transpose(w_hh)], axis=0),
                b=(b_ih + b_hh).reshape(1, 4 * H),
                input_size=I,
            )
        )
    return params


def encoder_rnn_forward(params, input_seq):
    """input_seq: [B, T, input_size] -> relu(lstm(input_seq)) : [B, T, H]."""
    x_tbi = jnp.transpose(input_seq, (1, 0, 2))   # time-major [T, B, I]
    out_tbh = lstm_encoder_pallas(params, x_tbi)  # single fused pallas_call
    return jnp.transpose(out_tbh, (1, 0, 2))      # back to [B, T, H]


# ----------------------------------------------------------------------------
# Pure-JAX reference (lax.scan LSTM with split weights) for correctness check.
# ----------------------------------------------------------------------------
def encoder_rnn_reference(params, input_seq):
    x = jnp.transpose(input_seq, (1, 0, 2)).astype(jnp.float32)
    n_layers = len(params)
    for li, p in enumerate(params):
        w, b = p["w"], p["b"]
        I = p["input_size"]
        H = w.shape[1] // 4
        w_ih_t, w_hh_t = w[:I], w[I:]
        B = x.shape[1]

        def step(carry, x_t, w_ih_t=w_ih_t, w_hh_t=w_hh_t, b=b, H=H):
            h, c = carry
            gates = x_t @ w_ih_t + h @ w_hh_t + b
            i = jax.nn.sigmoid(gates[:, 0 * H:1 * H])
            f = jax.nn.sigmoid(gates[:, 1 * H:2 * H])
            g = jnp.tanh(gates[:, 2 * H:3 * H])
            o = jax.nn.sigmoid(gates[:, 3 * H:4 * H])
            c = f * c + i * g
            h = o * jnp.tanh(c)
            return (h, c), h

        init = (jnp.zeros((B, H), jnp.float32), jnp.zeros((B, H), jnp.float32))
        _, hs = jax.lax.scan(step, init, x)
        x = jnp.maximum(hs, 0.0) if li == n_layers - 1 else hs
    return jnp.transpose(x, (1, 0, 2))


if __name__ == "__main__":
    # Small shapes consistent with the module's forward:
    # input_seq [batch=2, seq=8, input_size=16], hidden_size=32, num_layers=2.
    B, T, I, H, L = 2, 8, 16, 32, 2

    key = jax.random.PRNGKey(0)
    key, pkey, xkey = jax.random.split(key, 3)
    params = make_encoder_params(pkey, input_size=I, hidden_size=H,
                                 num_layers=L, bidirectional=False)
    x = jax.random.normal(xkey, (B, T, I), jnp.float32)

    out = encoder_rnn_forward(params, x)
    out = jax.block_until_ready(out)

    ref = encoder_rnn_reference(params, x)
    assert out.shape == (B, T, H)
    assert jnp.allclose(out, ref, atol=3e-5, rtol=1e-5), \
        float(jnp.max(jnp.abs(out - ref)))

    print("KERNEL_OK")
</pallas_src>

<mosaic_0001>
module attributes {stable_mosaic.version = 11 : i64} {
  func.func @encoder_lstm_kernel(%arg0: i32, %arg1: memref<8x2x16xf32, #tpu.memory_space<vmem>>, %arg2: memref<48x128xf32, #tpu.memory_space<vmem>>, %arg3: memref<1x128xf32, #tpu.memory_space<vmem>>, %arg4: memref<64x128xf32, #tpu.memory_space<vmem>>, %arg5: memref<1x128xf32, #tpu.memory_space<vmem>>, %arg6: memref<8x2x32xf32, #tpu.memory_space<vmem>>, %arg7: memref<8x2x32xf32, #tpu.memory_space<vmem>>) attributes {dimension_semantics = [#tpu.dimension_semantics<arbitrary>], iteration_bounds = array<i64: 1>, scalar_prefetch = 0 : i64, scratch_operands = 1 : i64, tpu.core_type = #tpu.core_type<tc>, window_params = [{pipeline_mode = #tpu.pipeline_mode<synchronous>, transform_indices = @transform_0, window_bounds = array<i64: 8, 2, 16>}, {pipeline_mode = #tpu.pipeline_mode<synchronous>, transform_indices = @transform_1, window_bounds = array<i64: 48, 128>}, {pipeline_mode = #tpu.pipeline_mode<synchronous>, transform_indices = @transform_2, window_bounds = array<i64: 1, 128>}, {pipeline_mode = #tpu.pipeline_mode<synchronous>, transform_indices = @transform_3, window_bounds = array<i64: 64, 128>}, {pipeline_mode = #tpu.pipeline_mode<synchronous>, transform_indices = @transform_4, window_bounds = array<i64: 1, 128>}, {pipeline_mode = #tpu.pipeline_mode<synchronous>, transform_indices = @transform_5, window_bounds = array<i64: 8, 2, 32>}]} {
    %c0 = arith.constant 0 : index
    %c0_0 = arith.constant 0 : index
    %0 = vector.load %arg2[%c0, %c0_0] : memref<48x128xf32, #tpu.memory_space<vmem>>, vector<48x128xf32>
    %c0_1 = arith.constant 0 : index
    %c0_2 = arith.constant 0 : index
    %1 = vector.load %arg3[%c0_1, %c0_2] : memref<1x128xf32, #tpu.memory_space<vmem>>, vector<1x128xf32>
    %cst = arith.constant 0.000000e+00 : f32
    %2 = vector.broadcast %cst : f32 to vector<2x32xf32>
    %cst_3 = arith.constant 0.000000e+00 : f32
    %3 = vector.broadcast %cst_3 : f32 to vector<2x32xf32>
    %c0_i32 = arith.constant 0 : i32
    %4 = arith.index_cast %c0_i32 : i32 to index
    %c0_4 = arith.constant 0 : index
    %c0_5 = arith.constant 0 : index
    %5 = vector.load %arg1[%4, %c0_4, %c0_5] : memref<8x2x16xf32, #tpu.memory_space<vmem>>, vector<1x2x16xf32>
    %6 = vector.shape_cast %5 : vector<1x2x16xf32> to vector<2x16xf32>
    %7 = tpu.concatenate %6, %2 in 1 : vector<2x16xf32>, vector<2x32xf32> -> vector<2x48xf32>
    %cst_6 = arith.constant dense<0.000000e+00> : vector<2x128xf32>
    %8 = tpu.matmul %7, %0, %cst_6 {dimension_numbers = #tpu.dot_dimension_numbers<[1], [0], [0], [1], [0, 0, 1, 1], [], []>} : vector<2x48xf32>, vector<48x128xf32>, vector<2x128xf32> -> vector<2x128xf32>
    %9 = vector.broadcast %1 : vector<1x128xf32> to vector<2x128xf32>
    %10 = arith.addf %8, %9 : vector<2x128xf32>
    %11 = vector.extract_strided_slice %10 {offsets = [0, 0], sizes = [2, 32], strides = [1, 1]} : vector<2x128xf32> to vector<2x32xf32>
    %12 = arith.negf %11 : vector<2x32xf32>
    %13 = math.exp %12 : vector<2x32xf32>
    %cst_7 = arith.constant 1.000000e+00 : f32
    %14 = vector.broadcast %cst_7 : f32 to vector<2x32xf32>
    %15 = arith.addf %14, %13 : vector<2x32xf32>
    %16 = arith.divf %14, %15 : vector<2x32xf32>
    %17 = vector.extract_strided_slice %10 {offsets = [0, 32], sizes = [2, 32], strides = [1, 1]} : vector<2x128xf32> to vector<2x32xf32>
    %18 = arith.negf %17 : vector<2x32xf32>
    %19 = math.exp %18 : vector<2x32xf32>
    %cst_8 = arith.constant 1.000000e+00 : f32
    %20 = vector.broadcast %cst_8 : f32 to vector<2x32xf32>
    %21 = arith.addf %20, %19 : vector<2x32xf32>
    %22 = arith.divf %20, %21 : vector<2x32xf32>
    %23 = vector.extract_strided_slice %10 {offsets = [0, 64], sizes = [2, 32], strides = [1, 1]} : vector<2x128xf32> to vector<2x32xf32>
    %24 = math.tanh %23 : vector<2x32xf32>
    %25 = vector.extract_strided_slice %10 {offsets = [0, 96], sizes = [2, 32], strides = [1, 1]} : vector<2x128xf32> to vector<2x32xf32>
    %26 = arith.negf %25 : vector<2x32xf32>
    %27 = math.exp %26 : vector<2x32xf32>
    %cst_9 = arith.constant 1.000000e+00 : f32
    %28 = vector.broadcast %cst_9 : f32 to vector<2x32xf32>
    %29 = arith.addf %28, %27 : vector<2x32xf32>
    %30 = arith.divf %28, %29 : vector<2x32xf32>
    %31 = arith.mulf %22, %3 : vector<2x32xf32>
    %32 = arith.mulf %16, %24 : vector<2x32xf32>
    %33 = arith.addf %31, %32 : vector<2x32xf32>
    %34 = math.tanh %33 : vector<2x32xf32>
    %35 = arith.mulf %30, %34 : vector<2x32xf32>
    %36 = arith.index_cast %c0_i32 : i32 to index
    %c0_10 = arith.constant 0 : index
    %c0_11 = arith.constant 0 : index
    %37 = vector.load %arg7[%36, %c0_10, %c0_11] : memref<8x2x32xf32, #tpu.memory_space<vmem>>, vector<1x2x32xf32>
    %38 = vector.shape_cast %37 : vector<1x2x32xf32> to vector<2x32xf32>
    %39 = vector.shape_cast %35 : vector<2x32xf32> to vector<1x2x32xf32>
    tpu.vector_store %arg7[%36, %c0_10, %c0_11], %39 {strides = array<i32>} : memref<8x2x32xf32, #tpu.memory_space<vmem>>, vector<1x2x32xf32>,
    %c1_i32 = arith.constant 1 : i32
    %40 = arith.index_cast %c1_i32 : i32 to index
    %c0_12 = arith.constant 0 : index
    %c0_13 = arith.constant 0 : index
    %41 = vector.load %arg1[%40, %c0_12, %c0_13] : memref<8x2x16xf32, #tpu.memory_space<vmem>>, vector<1x2x16xf32>
    %42 = vector.shape_cast %41 : vector<1x2x16xf32> to vector<2x16xf32>
    %43 = tpu.concatenate %42, %35 in 1 : vector<2x16xf32>, vector<2x32xf32> -> vector<2x48xf32>
    %cst_14 = arith.constant dense<0.000000e+00> : vector<2x128xf32>
    %44 = tpu.matmul %43, %0, %cst_14 {dimension_numbers = #tpu.dot_dimension_numbers<[1], [0], [0], [1], [0, 0, 1, 1], [], []>} : vector<2x48xf32>, vector<48x128xf32>, vector<2x128xf32> -> vector<2x128xf32>
    %45 = vector.broadcast %1 : vector<1x128xf32> to vector<2x128xf32>
    %46 = arith.addf %44, %45 : vector<2x128xf32>
    %47 = vector.extract_strided_slice %46 {offsets = [0, 0], sizes = [2, 32], strides = [1, 1]} : vector<2x128xf32> to vector<2x32xf32>
    %48 = arith.negf %47 : vector<2x32xf32>
    %49 = math.exp %48 : vector<2x32xf32>
    %cst_15 = arith.constant 1.000000e+00 : f32
    %50 = vector.broadcast %cst_15 : f32 to vector<2x32xf32>
    %51 = arith.addf %50, %49 : vector<2x32xf32>
    %52 = arith.divf %50, %51 : vector<2x32xf32>
    %53 = vector.extract_strided_slice %46 {offsets = [0, 32], sizes = [2, 32], strides = [1, 1]} : vector<2x128xf32> to vector<2x32xf32>
    %54 = arith.negf %53 : vector<2x32xf32>
    %55 = math.exp %54 : vector<2x32xf32>
    %cst_16 = arith.constant 1.000000e+00 : f32
    %56 = vector.broadcast %cst_16 : f32 to vector<2x32xf32>
    %57 = arith.addf %56, %55 : vector<2x32xf32>
    %58 = arith.divf %56, %57 : vector<2x32xf32>
    %59 = vector.extract_strided_slice %46 {offsets = [0, 64], sizes = [2, 32], strides = [1, 1]} : vector<2x128xf32> to vector<2x32xf32>
    %60 = math.tanh %59 : vector<2x32xf32>
    %61 = vector.extract_strided_slice %46 {offsets = [0, 96], sizes = [2, 32], strides = [1, 1]} : vector<2x128xf32> to vector<2x32xf32>
    %62 = arith.negf %61 : vector<2x32xf32>
    %63 = math.exp %62 : vector<2x32xf32>
    %cst_17 = arith.constant 1.000000e+00 : f32
    %64 = vector.broadcast %cst_17 : f32 to vector<2x32xf32>
    %65 = arith.addf %64, %63 : vector<2x32xf32>
    %66 = arith.divf %64, %65 : vector<2x32xf32>
    %67 = arith.mulf %58, %33 : vector<2x32xf32>
    %68 = arith.mulf %52, %60 : vector<2x32xf32>
    %69 = arith.addf %67, %68 : vector<2x32xf32>
    %70 = math.tanh %69 : vector<2x32xf32>
    %71 = arith.mulf %66, %70 : vector<2x32xf32>
    %72 = arith.index_cast %c1_i32 : i32 to index
    %c0_18 = arith.constant 0 : index
    %c0_19 = arith.constant 0 : index
    %73 = vector.load %arg7[%72, %c0_18, %c0_19] : memref<8x2x32xf32, #tpu.memory_space<vmem>>, vector<1x2x32xf32>
    %74 = vector.shape_cast %73 : vector<1x2x32xf32> to vector<2x32xf32>
    %75 = vector.shape_cast %71 : vector<2x32xf32> to vector<1x2x32xf32>
    tpu.vector_store %arg7[%72, %c0_18, %c0_19], %75 {strides = array<i32>} : memref<8x2x32xf32, #tpu.memory_space<vmem>>, vector<1x2x32xf32>,
    %c2_i32 = arith.constant 2 : i32
    %76 = arith.index_cast %c2_i32 : i32 to index
    %c0_20 = arith.constant 0 : index
    %c0_21 = arith.constant 0 : index
    %77 = vector.load %arg1[%76, %c0_20, %c0_21] : memref<8x2x16xf32, #tpu.memory_space<vmem>>, vector<1x2x16xf32>
    %78 = vector.shape_cast %77 : vector<1x2x16xf32> to vector<2x16xf32>
    %79 = tpu.concatenate %78, %71 in 1 : vector<2x16xf32>, vector<2x32xf32> -> vector<2x48xf32>
    %cst_22 = arith.constant dense<0.000000e+00> : vector<2x128xf32>
    %80 = tpu.matmul %79, %0, %cst_22 {dimension_numbers = #tpu.dot_dimension_numbers<[1], [0], [0], [1], [0, 0, 1, 1], [], []>} : vector<2x48xf32>, vector<48x128xf32>, vector<2x128xf32> -> vector<2x128xf32>
    %81 = vector.broadcast %1 : vector<1x128xf32> to vector<2x128xf32>
    %82 = arith.addf %80, %81 : vector<2x128xf32>
    %83 = vector.extract_strided_slice %82 {offsets = [0, 0], sizes = [2, 32], strides = [1, 1]} : vector<2x128xf32> to vector<2x32xf32>
    %84 = arith.negf %83 : vector<2x32xf32>
    %85 = math.exp %84 : vector<2x32xf32>
    %cst_23 = arith.constant 1.000000e+00 : f32
    %86 = vector.broadcast %cst_23 : f32 to vector<2x32xf32>
    %87 = arith.addf %86, %85 : vector<2x32xf32>
    %88 = arith.divf %86, %87 : vector<2x32xf32>
    %89 = vector.extract_strided_slice %82 {offsets = [0, 32], sizes = [2, 32], strides = [1, 1]} : vector<2x128xf32> to vector<2x32xf32>
    %90 = arith.negf %89 : vector<2x32xf32>
    %91 = math.exp %90 : vector<2x32xf32>
    %cst_24 = arith.constant 1.000000e+00 : f32
    %92 = vector.broadcast %cst_24 : f32 to vector<2x32xf32>
    %93 = arith.addf %92, %91 : vector<2x32xf32>
    %94 = arith.divf %92, %93 : vector<2x32xf32>
    %95 = vector.extract_strided_slice %82 {offsets = [0, 64], sizes = [2, 32], strides = [1, 1]} : vector<2x128xf32> to vector<2x32xf32>
    %96 = math.tanh %95 : vector<2x32xf32>
    %97 = vector.extract_strided_slice %82 {offsets = [0, 96], sizes = [2, 32], strides = [1, 1]} : vector<2x128xf32> to vector<2x32xf32>
    %98 = arith.negf %97 : vector<2x32xf32>
    %99 = math.exp %98 : vector<2x32xf32>
    %cst_25 = arith.constant 1.000000e+00 : f32
    %100 = vector.broadcast %cst_25 : f32 to vector<2x32xf32>
    %101 = arith.addf %100, %99 : vector<2x32xf32>
    %102 = arith.divf %100, %101 : vector<2x32xf32>
    %103 = arith.mulf %94, %69 : vector<2x32xf32>
    %104 = arith.mulf %88, %96 : vector<2x32xf32>
    %105 = arith.addf %103, %104 : vector<2x32xf32>
    %106 = math.tanh %105 : vector<2x32xf32>
    %107 = arith.mulf %102, %106 : vector<2x32xf32>
    %108 = arith.index_cast %c2_i32 : i32 to index
    %c0_26 = arith.constant 0 : index
    %c0_27 = arith.constant 0 : index
    %109 = vector.load %arg7[%108, %c0_26, %c0_27] : memref<8x2x32xf32, #tpu.memory_space<vmem>>, vector<1x2x32xf32>
    %110 = vector.shape_cast %109 : vector<1x2x32xf32> to vector<2x32xf32>
    %111 = vector.shape_cast %107 : vector<2x32xf32> to vector<1x2x32xf32>
    tpu.vector_store %arg7[%108, %c0_26, %c0_27], %111 {strides = array<i32>} : memref<8x2x32xf32, #tpu.memory_space<vmem>>, vector<1x2x32xf32>,
    %c3_i32 = arith.constant 3 : i32
    %112 = arith.index_cast %c3_i32 : i32 to index
    %c0_28 = arith.constant 0 : index
    %c0_29 = arith.constant 0 : index
    %113 = vector.load %arg1[%112, %c0_28, %c0_29] : memref<8x2x16xf32, #tpu.memory_space<vmem>>, vector<1x2x16xf32>
    %114 = vector.shape_cast %113 : vector<1x2x16xf32> to vector<2x16xf32>
    %115 = tpu.concatenate %114, %107 in 1 : vector<2x16xf32>, vector<2x32xf32> -> vector<2x48xf32>
    %cst_30 = arith.constant dense<0.000000e+00> : vector<2x128xf32>
    %116 = tpu.matmul %115, %0, %cst_30 {dimension_numbers = #tpu.dot_dimension_numbers<[1], [0], [0], [1], [0, 0, 1, 1], [], []>} : vector<2x48xf32>, vector<48x128xf32>, vector<2x128xf32> -> vector<2x128xf32>
    %117 = vector.broadcast %1 : vector<1x128xf32> to vector<2x128xf32>
    %118 = arith.addf %116, %117 : vector<2x128xf32>
    %119 = vector.extract_strided_slice %118 {offsets = [0, 0], sizes = [2, 32], strides = [1, 1]} : vector<2x128xf32> to vector<2x32xf32>
    %120 = arith.negf %119 : vector<2x32xf32>
    %121 = math.exp %120 : vector<2x32xf32>
    %cst_31 = arith.constant 1.000000e+00 : f32
    %122 = vector.broadcast %cst_31 : f32 to vector<2x32xf32>
    %123 = arith.addf %122, %121 : vector<2x32xf32>
    %124 = arith.divf %122, %123 : vector<2x32xf32>
    %125 = vector.extract_strided_slice %118 {offsets = [0, 32], sizes = [2, 32], strides = [1, 1]} : vector<2x128xf32> to vector<2x32xf32>
    %126 = arith.negf %125 : vector<2x32xf32>
    %127 = math.exp %126 : vector<2x32xf32>
    %cst_32 = arith.constant 1.000000e+00 : f32
    %128 = vector.broadcast %cst_32 : f32 to vector<2x32xf32>
    %129 = arith.addf %128, %127 : vector<2x32xf32>
    %130 = arith.divf %128, %129 : vector<2x32xf32>
    %131 = vector.extract_strided_slice %118 {offsets = [0, 64], sizes = [2, 32], strides = [1, 1]} : vector<2x128xf32> to vector<2x32xf32>
    %132 = math.tanh %131 : vector<2x32xf32>
    %133 = vector.extract_strided_slice %118 {offsets = [0, 96], sizes = [2, 32], strides = [1, 1]} : vector<2x128xf32> to vector<2x32xf32>
    %134 = arith.negf %133 : vector<2x32xf32>
    %135 = math.exp %134 : vector<2x32xf32>
    %cst_33 = arith.constant 1.000000e+00 : f32
    %136 = vector.broadcast %cst_33 : f32 to vector<2x32xf32>
    %137 = arith.addf %136, %135 : vector<2x32xf32>
    %138 = arith.divf %136, %137 : vector<2x32xf32>
    %139 = arith.mulf %130, %105 : vector<2x32xf32>
    %140 = arith.mulf %124, %132 : vector<2x32xf32>
    %141 = arith.addf %139, %140 : vector<2x32xf32>
    %142 = math.tanh %141 : vector<2x32xf32>
    %143 = arith.mulf %138, %142 : vector<2x32xf32>
    %144 = arith.index_cast %c3_i32 : i32 to index
    %c0_34 = arith.constant 0 : index
    %c0_35 = arith.constant 0 : index
    %145 = vector.load %arg7[%144, %c0_34, %c0_35] : memref<8x2x32xf32, #tpu.memory_space<vmem>>, vector<1x2x32xf32>
    %146 = vector.shape_cast %145 : vector<1x2x32xf32> to vector<2x32xf32>
    %147 = vector.shape_cast %143 : vector<2x32xf32> to vector<1x2x32xf32>
    tpu.vector_store %arg7[%144, %c0_34, %c0_35], %147 {strides = array<i32>} : memref<8x2x32xf32, #tpu.memory_space<vmem>>, vector<1x2x32xf32>,
    %c4_i32 = arith.constant 4 : i32
    %148 = arith.index_cast %c4_i32 : i32 to index
    %c0_36 = arith.constant 0 : index
    %c0_37 = arith.constant 0 : index
    %149 = vector.load %arg1[%148, %c0_36, %c0_37] : memref<8x2x16xf32, #tpu.memory_space<vmem>>, vector<1x2x16xf32>
    %150 = vector.shape_cast %149 : vector<1x2x16xf32> to vector<2x16xf32>
    %151 = tpu.concatenate %150, %143 in 1 : vector<2x16xf32>, vector<2x32xf32> -> vector<2x48xf32>
    %cst_38 = arith.constant dense<0.000000e+00> : vector<2x128xf32>
    %152 = tpu.matmul %151, %0, %cst_38 {dimension_numbers = #tpu.dot_dimension_numbers<[1], [0], [0], [1], [0, 0, 1, 1], [], []>} : vector<2x48xf32>, vector<48x128xf32>, vector<2x128xf32> -> vector<2x128xf32>
    %153 = vector.broadcast %1 : vector<1x128xf32> to vector<2x128xf32>
    %154 = arith.addf %152, %153 : vector<2x128xf32>
    %155 = vector.extract_strided_slice %154 {offsets = [0, 0], sizes = [2, 32], strides = [1, 1]} : vector<2x128xf32> to vector<2x32xf32>
    %156 = arith.negf %155 : vector<2x32xf32>
    %157 = math.exp %156 : vector<2x32xf32>
    %cst_39 = arith.constant 1.000000e+00 : f32
    %158 = vector.broadcast %cst_39 : f32 to vector<2x32xf32>
    %159 = arith.addf %158, %157 : vector<2x32xf32>
    %160 = arith.divf %158, %159 : vector<2x32xf32>
    %161 = vector.extract_strided_slice %154 {offsets = [0, 32], sizes = [2, 32], strides = [1, 1]} : vector<2x128xf32> to vector<2x32xf32>
    %162 = arith.negf %161 : vector<2x32xf32>
    %163 = math.exp %162 : vector<2x32xf32>
    %cst_40 = arith.constant 1.000000e+00 : f32
    %164 = vector.broadcast %cst_40 : f32 to vector<2x32xf32>
    %165 = arith.addf %164, %163 : vector<2x32xf32>
    %166 = arith.divf %164, %165 : vector<2x32xf32>
    %167 = vector.extract_strided_slice %154 {offsets = [0, 64], sizes = [2, 32], strides = [1, 1]} : vector<2x128xf32> to vector<2x32xf32>
    %168 = math.tanh %167 : vector<2x32xf32>
    %169 = vector.extract_strided_slice %154 {offsets = [0, 96], sizes = [2, 32], strides = [1, 1]} : vector<2x128xf32> to vector<2x32xf32>
    %170 = arith.negf %169 : vector<2x32xf32>
    %171 = math.exp %170 : vector<2x32xf32>
    %cst_41 = arith.constant 1.000000e+00 : f32
    %172 = vector.broadcast %cst_41 : f32 to vector<2x32xf32>
    %173 = arith.addf %172, %171 : vector<2x32xf32>
    %174 = arith.divf %172, %173 : vector<2x32xf32>
    %175 = arith.mulf %166, %141 : vector<2x32xf32>
    %176 = arith.mulf %160, %168 : vector<2x32xf32>
    %177 = arith.addf %175, %176 : vector<2x32xf32>
    %178 = math.tanh %177 : vector<2x32xf32>
    %179 = arith.mulf %174, %178 : vector<2x32xf32>
    %180 = arith.index_cast %c4_i32 : i32 to index
    %c0_42 = arith.constant 0 : index
    %c0_43 = arith.constant 0 : index
    %181 = vector.load %arg7[%180, %c0_42, %c0_43] : memref<8x2x32xf32, #tpu.memory_space<vmem>>, vector<1x2x32xf32>
    %182 = vector.shape_cast %181 : vector<1x2x32xf32> to vector<2x32xf32>
    %183 = vector.shape_cast %179 : vector<2x32xf32> to vector<1x2x32xf32>
    tpu.vector_store %arg7[%180, %c0_42, %c0_43], %183 {strides = array<i32>} : memref<8x2x32xf32, #tpu.memory_space<vmem>>, vector<1x2x32xf32>,
    %c5_i32 = arith.constant 5 : i32
    %184 = arith.index_cast %c5_i32 : i32 to index
    %c0_44 = arith.constant 0 : index
    %c0_45 = arith.constant 0 : index
    %185 = vector.load %arg1[%184, %c0_44, %c0_45] : memref<8x2x16xf32, #tpu.memory_space<vmem>>, vector<1x2x16xf32>
    %186 = vector.shape_cast %185 : vector<1x2x16xf32> to vector<2x16xf32>
    %187 = tpu.concatenate %186, %179 in 1 : vector<2x16xf32>, vector<2x32xf32> -> vector<2x48xf32>
    %cst_46 = arith.constant dense<0.000000e+00> : vector<2x128xf32>
    %188 = tpu.matmul %187, %0, %cst_46 {dimension_numbers = #tpu.dot_dimension_numbers<[1], [0], [0], [1], [0, 0, 1, 1], [], []>} : vector<2x48xf32>, vector<48x128xf32>, vector<2x128xf32> -> vector<2x128xf32>
    %189 = vector.broadcast %1 : vector<1x128xf32> to vector<2x128xf32>
    %190 = arith.addf %188, %189 : vector<2x128xf32>
    %191 = vector.extract_strided_slice %190 {offsets = [0, 0], sizes = [2, 32], strides = [1, 1]} : vector<2x128xf32> to vector<2x32xf32>
    %192 = arith.negf %191 : vector<2x32xf32>
    %193 = math.exp %192 : vector<2x32xf32>
    %cst_47 = arith.constant 1.000000e+00 : f32
    %194 = vector.broadcast %cst_47 : f32 to vector<2x32xf32>
    %195 = arith.addf %194, %193 : vector<2x32xf32>
    %196 = arith.divf %194, %195 : vector<2x32xf32>
    %197 = vector.extract_strided_slice %190 {offsets = [0, 32], sizes = [2, 32], strides = [1, 1]} : vector<2x128xf32> to vector<2x32xf32>
    %198 = arith.negf %197 : vector<2x32xf32>
    %199 = math.exp %198 : vector<2x32xf32>
    %cst_48 = arith.constant 1.000000e+00 : f32
    %200 = vector.broadcast %cst_48 : f32 to vector<2x32xf32>
    %201 = arith.addf %200, %199 : vector<2x32xf32>
    %202 = arith.divf %200, %201 : vector<2x32xf32>
    %203 = vector.extract_strided_slice %190 {offsets = [0, 64], sizes = [2, 32], strides = [1, 1]} : vector<2x128xf32> to vector<2x32xf32>
    %204 = math.tanh %203 : vector<2x32xf32>
    %205 = vector.extract_strided_slice %190 {offsets = [0, 96], sizes = [2, 32], strides = [1, 1]} : vector<2x128xf32> to vector<2x32xf32>
    %206 = arith.negf %205 : vector<2x32xf32>
    %207 = math.exp %206 : vector<2x32xf32>
    %cst_49 = arith.constant 1.000000e+00 : f32
    %208 = vector.broadcast %cst_49 : f32 to vector<2x32xf32>
    %209 = arith.addf %208, %207 : vector<2x32xf32>
    %210 = arith.divf %208, %209 : vector<2x32xf32>
    %211 = arith.mulf %202, %177 : vector<2x32xf32>
    %212 = arith.mulf %196, %204 : vector<2x32xf32>
    %213 = arith.addf %211, %212 : vector<2x32xf32>
    %214 = math.tanh %213 : vector<2x32xf32>
    %215 = arith.mulf %210, %214 : vector<2x32xf32>
    %216 = arith.index_cast %c5_i32 : i32 to index
    %c0_50 = arith.constant 0 : index
    %c0_51 = arith.constant 0 : index
    %217 = vector.load %arg7[%216, %c0_50, %c0_51] : memref<8x2x32xf32, #tpu.memory_space<vmem>>, vector<1x2x32xf32>
    %218 = vector.shape_cast %217 : vector<1x2x32xf32> to vector<2x32xf32>
    %219 = vector.shape_cast %215 : vector<2x32xf32> to vector<1x2x32xf32>
    tpu.vector_store %arg7[%216, %c0_50, %c0_51], %219 {strides = array<i32>} : memref<8x2x32xf32, #tpu.memory_space<vmem>>, vector<1x2x32xf32>,
    %c6_i32 = arith.constant 6 : i32
    %220 = arith.index_cast %c6_i32 : i32 to index
    %c0_52 = arith.constant 0 : index
    %c0_53 = arith.constant 0 : index
    %221 = vector.load %arg1[%220, %c0_52, %c0_53] : memref<8x2x16xf32, #tpu.memory_space<vmem>>, vector<1x2x16xf32>
    %222 = vector.shape_cast %221 : vector<1x2x16xf32> to vector<2x16xf32>
    %223 = tpu.concatenate %222, %215 in 1 : vector<2x16xf32>, vector<2x32xf32> -> vector<2x48xf32>
    %cst_54 = arith.constant dense<0.000000e+00> : vector<2x128xf32>
    %224 = tpu.matmul %223, %0, %cst_54 {dimension_numbers = #tpu.dot_dimension_numbers<[1], [0], [0], [1], [0, 0, 1, 1], [], []>} : vector<2x48xf32>, vector<48x128xf32>, vector<2x128xf32> -> vector<2x128xf32>
    %225 = vector.broadcast %1 : vector<1x128xf32> to vector<2x128xf32>
    %226 = arith.addf %224, %225 : vector<2x128xf32>
    %227 = vector.extract_strided_slice %226 {offsets = [0, 0], sizes = [2, 32], strides = [1, 1]} : vector<2x128xf32> to vector<2x32xf32>
    %228 = arith.negf %227 : vector<2x32xf32>
    %229 = math.exp %228 : vector<2x32xf32>
    %cst_55 = arith.constant 1.000000e+00 : f32
    %230 = vector.broadcast %cst_55 : f32 to vector<2x32xf32>
    %231 = arith.addf %230, %229 : vector<2x32xf32>
    %232 = arith.divf %230, %231 : vector<2x32xf32>
    %233 = vector.extract_strided_slice %226 {offsets = [0, 32], sizes = [2, 32], strides = [1, 1]} : vector<2x128xf32> to vector<2x32xf32>
    %234 = arith.negf %233 : vector<2x32xf32>
    %235 = math.exp %234 : vector<2x32xf32>
    %cst_56 = arith.constant 1.000000e+00 : f32
    %236 = vector.broadcast %cst_56 : f32 to vector<2x32xf32>
    %237 = arith.addf %236, %235 : vector<2x32xf32>
    %238 = arith.divf %236, %237 : vector<2x32xf32>
    %239 = vector.extract_strided_slice %226 {offsets = [0, 64], sizes = [2, 32], strides = [1, 1]} : vector<2x128xf32> to vector<2x32xf32>
    %240 = math.tanh %239 : vector<2x32xf32>
    %241 = vector.extract_strided_slice %226 {offsets = [0, 96], sizes = [2, 32], strides = [1, 1]} : vector<2x128xf32> to vector<2x32xf32>
    %242 = arith.negf %241 : vector<2x32xf32>
    %243 = math.exp %242 : vector<2x32xf32>
    %cst_57 = arith.constant 1.000000e+00 : f32
    %244 = vector.broadcast %cst_57 : f32 to vector<2x32xf32>
    %245 = arith.addf %244, %243 : vector<2x32xf32>
    %246 = arith.divf %244, %245 : vector<2x32xf32>
    %247 = arith.mulf %238, %213 : vector<2x32xf32>
    %248 = arith.mulf %232, %240 : vector<2x32xf32>
    %249 = arith.addf %247, %248 : vector<2x32xf32>
    %250 = math.tanh %249 : vector<2x32xf32>
    %251 = arith.mulf %246, %250 : vector<2x32xf32>
    %252 = arith.index_cast %c6_i32 : i32 to index
    %c0_58 = arith.constant 0 : index
    %c0_59 = arith.constant 0 : index
    %253 = vector.load %arg7[%252, %c0_58, %c0_59] : memref<8x2x32xf32, #tpu.memory_space<vmem>>, vector<1x2x32xf32>
    %254 = vector.shape_cast %253 : vector<1x2x32xf32> to vector<2x32xf32>
    %255 = vector.shape_cast %251 : vector<2x32xf32> to vector<1x2x32xf32>
    tpu.vector_store %arg7[%252, %c0_58, %c0_59], %255 {strides = array<i32>} : memref<8x2x32xf32, #tpu.memory_space<vmem>>, vector<1x2x32xf32>,
    %c7_i32 = arith.constant 7 : i32
    %256 = arith.index_cast %c7_i32 : i32 to index
    %c0_60 = arith.constant 0 : index
    %c0_61 = arith.constant 0 : index
    %257 = vector.load %arg1[%256, %c0_60, %c0_61] : memref<8x2x16xf32, #tpu.memory_space<vmem>>, vector<1x2x16xf32>
    %258 = vector.shape_cast %257 : vector<1x2x16xf32> to vector<2x16xf32>
    %259 = tpu.concatenate %258, %251 in 1 : vector<2x16xf32>, vector<2x32xf32> -> vector<2x48xf32>
    %cst_62 = arith.constant dense<0.000000e+00> : vector<2x128xf32>
    %260 = tpu.matmul %259, %0, %cst_62 {dimension_numbers = #tpu.dot_dimension_numbers<[1], [0], [0], [1], [0, 0, 1, 1], [], []>} : vector<2x48xf32>, vector<48x128xf32>, vector<2x128xf32> -> vector<2x128xf32>
    %261 = vector.broadcast %1 : vector<1x128xf32> to vector<2x128xf32>
    %262 = arith.addf %260, %261 : vector<2x128xf32>
    %263 = vector.extract_strided_slice %262 {offsets = [0, 0], sizes = [2, 32], strides = [1, 1]} : vector<2x128xf32> to vector<2x32xf32>
    %264 = arith.negf %263 : vector<2x32xf32>
    %265 = math.exp %264 : vector<2x32xf32>
    %cst_63 = arith.constant 1.000000e+00 : f32
    %266 = vector.broadcast %cst_63 : f32 to vector<2x32xf32>
    %267 = arith.addf %266, %265 : vector<2x32xf32>
    %268 = arith.divf %266, %267 : vector<2x32xf32>
    %269 = vector.extract_strided_slice %262 {offsets = [0, 32], sizes = [2, 32], strides = [1, 1]} : vector<2x128xf32> to vector<2x32xf32>
    %270 = arith.negf %269 : vector<2x32xf32>
    %271 = math.exp %270 : vector<2x32xf32>
    %cst_64 = arith.constant 1.000000e+00 : f32
    %272 = vector.broadcast %cst_64 : f32 to vector<2x32xf32>
    %273 = arith.addf %272, %271 : vector<2x32xf32>
    %274 = arith.divf %272, %273 : vector<2x32xf32>
    %275 = vector.extract_strided_slice %262 {offsets = [0, 64], sizes = [2, 32], strides = [1, 1]} : vector<2x128xf32> to vector<2x32xf32>
    %276 = math.tanh %275 : vector<2x32xf32>
    %277 = vector.extract_strided_slice %262 {offsets = [0, 96], sizes = [2, 32], strides = [1, 1]} : vector<2x128xf32> to vector<2x32xf32>
    %278 = arith.negf %277 : vector<2x32xf32>
    %279 = math.exp %278 : vector<2x32xf32>
    %cst_65 = arith.constant 1.000000e+00 : f32
    %280 = vector.broadcast %cst_65 : f32 to vector<2x32xf32>
    %281 = arith.addf %280, %279 : vector<2x32xf32>
    %282 = arith.divf %280, %281 : vector<2x32xf32>
    %283 = arith.mulf %274, %249 : vector<2x32xf32>
    %284 = arith.mulf %268, %276 : vector<2x32xf32>
    %285 = arith.addf %283, %284 : vector<2x32xf32>
    %286 = math.tanh %285 : vector<2x32xf32>
    %287 = arith.mulf %282, %286 : vector<2x32xf32>
    %288 = arith.index_cast %c7_i32 : i32 to index
    %c0_66 = arith.constant 0 : index
    %c0_67 = arith.constant 0 : index
    %289 = vector.load %arg7[%288, %c0_66, %c0_67] : memref<8x2x32xf32, #tpu.memory_space<vmem>>, vector<1x2x32xf32>
    %290 = vector.shape_cast %289 : vector<1x2x32xf32> to vector<2x32xf32>
    %291 = vector.shape_cast %287 : vector<2x32xf32> to vector<1x2x32xf32>
    tpu.vector_store %arg7[%288, %c0_66, %c0_67], %291 {strides = array<i32>} : memref<8x2x32xf32, #tpu.memory_space<vmem>>, vector<1x2x32xf32>,
    %c8_i32 = arith.constant 8 : i32
    %c0_68 = arith.constant 0 : index
    %c0_69 = arith.constant 0 : index
    %292 = vector.load %arg4[%c0_68, %c0_69] : memref<64x128xf32, #tpu.memory_space<vmem>>, vector<64x128xf32>
    %c0_70 = arith.constant 0 : index
    %c0_71 = arith.constant 0 : index
    %293 = vector.load %arg5[%c0_70, %c0_71] : memref<1x128xf32, #tpu.memory_space<vmem>>, vector<1x128xf32>
    %cst_72 = arith.constant 0.000000e+00 : f32
    %294 = vector.broadcast %cst_72 : f32 to vector<2x32xf32>
    %cst_73 = arith.constant 0.000000e+00 : f32
    %295 = vector.broadcast %cst_73 : f32 to vector<2x32xf32>
    %c0_i32_74 = arith.constant 0 : i32
    %296 = arith.index_cast %c0_i32_74 : i32 to index
    %c0_75 = arith.constant 0 : index
    %c0_76 = arith.constant 0 : index
    %297 = vector.load %arg7[%296, %c0_75, %c0_76] : memref<8x2x32xf32, #tpu.memory_space<vmem>>, vector<1x2x32xf32>
    %298 = vector.shape_cast %297 : vector<1x2x32xf32> to vector<2x32xf32>
    %299 = tpu.concatenate %298, %294 in 1 : vector<2x32xf32>, vector<2x32xf32> -> vector<2x64xf32>
    %cst_77 = arith.constant dense<0.000000e+00> : vector<2x128xf32>
    %300 = tpu.matmul %299, %292, %cst_77 {dimension_numbers = #tpu.dot_dimension_numbers<[1], [0], [0], [1], [0, 0, 1, 1], [], []>} : vector<2x64xf32>, vector<64x128xf32>, vector<2x128xf32> -> vector<2x128xf32>
    %301 = vector.broadcast %293 : vector<1x128xf32> to vector<2x128xf32>
    %302 = arith.addf %300, %301 : vector<2x128xf32>
    %303 = vector.extract_strided_slice %302 {offsets = [0, 0], sizes = [2, 32], strides = [1, 1]} : vector<2x128xf32> to vector<2x32xf32>
    %304 = arith.negf %303 : vector<2x32xf32>
    %305 = math.exp %304 : vector<2x32xf32>
    %cst_78 = arith.constant 1.000000e+00 : f32
    %306 = vector.broadcast %cst_78 : f32 to vector<2x32xf32>
    %307 = arith.addf %306, %305 : vector<2x32xf32>
    %308 = arith.divf %306, %307 : vector<2x32xf32>
    %309 = vector.extract_strided_slice %302 {offsets = [0, 32], sizes = [2, 32], strides = [1, 1]} : vector<2x128xf32> to vector<2x32xf32>
    %310 = arith.negf %309 : vector<2x32xf32>
    %311 = math.exp %310 : vector<2x32xf32>
    %cst_79 = arith.constant 1.000000e+00 : f32
    %312 = vector.broadcast %cst_79 : f32 to vector<2x32xf32>
    %313 = arith.addf %312, %311 : vector<2x32xf32>
    %314 = arith.divf %312, %313 : vector<2x32xf32>
    %315 = vector.extract_strided_slice %302 {offsets = [0, 64], sizes = [2, 32], strides = [1, 1]} : vector<2x128xf32> to vector<2x32xf32>
    %316 = math.tanh %315 : vector<2x32xf32>
    %317 = vector.extract_strided_slice %302 {offsets = [0, 96], sizes = [2, 32], strides = [1, 1]} : vector<2x128xf32> to vector<2x32xf32>
    %318 = arith.negf %317 : vector<2x32xf32>
    %319 = math.exp %318 : vector<2x32xf32>
    %cst_80 = arith.constant 1.000000e+00 : f32
    %320 = vector.broadcast %cst_80 : f32 to vector<2x32xf32>
    %321 = arith.addf %320, %319 : vector<2x32xf32>
    %322 = arith.divf %320, %321 : vector<2x32xf32>
    %323 = arith.mulf %314, %295 : vector<2x32xf32>
    %324 = arith.mulf %308, %316 : vector<2x32xf32>
    %325 = arith.addf %323, %324 : vector<2x32xf32>
    %326 = math.tanh %325 : vector<2x32xf32>
    %327 = arith.mulf %322, %326 : vector<2x32xf32>
    %cst_81 = arith.constant 0.000000e+00 : f32
    %328 = vector.broadcast %cst_81 : f32 to vector<2x32xf32>
    %329 = arith.maximumf %327, %328 : vector<2x32xf32>
    %330 = arith.index_cast %c0_i32_74 : i32 to index
    %c0_82 = arith.constant 0 : index
    %c0_83 = arith.constant 0 : index
    %331 = vector.load %arg6[%330, %c0_82, %c0_83] : memref<8x2x32xf32, #tpu.memory_space<vmem>>, vector<1x2x32xf32>
    %332 = vector.shape_cast %331 : vector<1x2x32xf32> to vector<2x32xf32>
    %333 = vector.shape_cast %329 : vector<2x32xf32> to vector<1x2x32xf32>
    tpu.vector_store %arg6[%330, %c0_82, %c0_83], %333 {strides = array<i32>} : memref<8x2x32xf32, #tpu.memory_space<vmem>>, vector<1x2x32xf32>,
    %c1_i32_84 = arith.constant 1 : i32
    %334 = arith.index_cast %c1_i32_84 : i32 to index
    %c0_85 = arith.constant 0 : index
    %c0_86 = arith.constant 0 : index
    %335 = vector.load %arg7[%334, %c0_85, %c0_86] : memref<8x2x32xf32, #tpu.memory_space<vmem>>, vector<1x2x32xf32>
    %336 = vector.shape_cast %335 : vector<1x2x32xf32> to vector<2x32xf32>
    %337 = tpu.concatenate %336, %327 in 1 : vector<2x32xf32>, vector<2x32xf32> -> vector<2x64xf32>
    %cst_87 = arith.constant dense<0.000000e+00> : vector<2x128xf32>
    %338 = tpu.matmul %337, %292, %cst_87 {dimension_numbers = #tpu.dot_dimension_numbers<[1], [0], [0], [1], [0, 0, 1, 1], [], []>} : vector<2x64xf32>, vector<64x128xf32>, vector<2x128xf32> -> vector<2x128xf32>
    %339 = vector.broadcast %293 : vector<1x128xf32> to vector<2x128xf32>
    %340 = arith.addf %338, %339 : vector<2x128xf32>
    %341 = vector.extract_strided_slice %340 {offsets = [0, 0], sizes = [2, 32], strides = [1, 1]} : vector<2x128xf32> to vector<2x32xf32>
    %342 = arith.negf %341 : vector<2x32xf32>
    %343 = math.exp %342 : vector<2x32xf32>
    %cst_88 = arith.constant 1.000000e+00 : f32
    %344 = vector.broadcast %cst_88 : f32 to vector<2x32xf32>
    %345 = arith.addf %344, %343 : vector<2x32xf32>
    %346 = arith.divf %344, %345 : vector<2x32xf32>
    %347 = vector.extract_strided_slice %340 {offsets = [0, 32], sizes = [2, 32], strides = [1, 1]} : vector<2x128xf32> to vector<2x32xf32>
    %348 = arith.negf %347 : vector<2x32xf32>
    %349 = math.exp %348 : vector<2x32xf32>
    %cst_89 = arith.constant 1.000000e+00 : f32
    %350 = vector.broadcast %cst_89 : f32 to vector<2x32xf32>
    %351 = arith.addf %350, %349 : vector<2x32xf32>
    %352 = arith.divf %350, %351 : vector<2x32xf32>
    %353 = vector.extract_strided_slice %340 {offsets = [0, 64], sizes = [2, 32], strides = [1, 1]} : vector<2x128xf32> to vector<2x32xf32>
    %354 = math.tanh %353 : vector<2x32xf32>
    %355 = vector.extract_strided_slice %340 {offsets = [0, 96], sizes = [2, 32], strides = [1, 1]} : vector<2x128xf32> to vector<2x32xf32>
    %356 = arith.negf %355 : vector<2x32xf32>
    %357 = math.exp %356 : vector<2x32xf32>
    %cst_90 = arith.constant 1.000000e+00 : f32
    %358 = vector.broadcast %cst_90 : f32 to vector<2x32xf32>
    %359 = arith.addf %358, %357 : vector<2x32xf32>
    %360 = arith.divf %358, %359 : vector<2x32xf32>
    %361 = arith.mulf %352, %325 : vector<2x32xf32>
    %362 = arith.mulf %346, %354 : vector<2x32xf32>
    %363 = arith.addf %361, %362 : vector<2x32xf32>
    %364 = math.tanh %363 : vector<2x32xf32>
    %365 = arith.mulf %360, %364 : vector<2x32xf32>
    %cst_91 = arith.constant 0.000000e+00 : f32
    %366 = vector.broadcast %cst_91 : f32 to vector<2x32xf32>
    %367 = arith.maximumf %365, %366 : vector<2x32xf32>
    %368 = arith.index_cast %c1_i32_84 : i32 to index
    %c0_92 = arith.constant 0 : index
    %c0_93 = arith.constant 0 : index
    %369 = vector.load %arg6[%368, %c0_92, %c0_93] : memref<8x2x32xf32, #tpu.memory_space<vmem>>, vector<1x2x32xf32>
    %370 = vector.shape_cast %369 : vector<1x2x32xf32> to vector<2x32xf32>
    %371 = vector.shape_cast %367 : vector<2x32xf32> to vector<1x2x32xf32>
    tpu.vector_store %arg6[%368, %c0_92, %c0_93], %371 {strides = array<i32>} : memref<8x2x32xf32, #tpu.memory_space<vmem>>, vector<1x2x32xf32>,
    %c2_i32_94 = arith.constant 2 : i32
    %372 = arith.index_cast %c2_i32_94 : i32 to index
    %c0_95 = arith.constant 0 : index
    %c0_96 = arith.constant 0 : index
    %373 = vector.load %arg7[%372, %c0_95, %c0_96] : memref<8x2x32xf32, #tpu.memory_space<vmem>>, vector<1x2x32xf32>
    %374 = vector.shape_cast %373 : vector<1x2x32xf32> to vector<2x32xf32>
    %375 = tpu.concatenate %374, %365 in 1 : vector<2x32xf32>, vector<2x32xf32> -> vector<2x64xf32>
    %cst_97 = arith.constant dense<0.000000e+00> : vector<2x128xf32>
    %376 = tpu.matmul %375, %292, %cst_97 {dimension_numbers = #tpu.dot_dimension_numbers<[1], [0], [0], [1], [0, 0, 1, 1], [], []>} : vector<2x64xf32>, vector<64x128xf32>, vector<2x128xf32> -> vector<2x128xf32>
    %377 = vector.broadcast %293 : vector<1x128xf32> to vector<2x128xf32>
    %378 = arith.addf %376, %377 : vector<2x128xf32>
    %379 = vector.extract_strided_slice %378 {offsets = [0, 0], sizes = [2, 32], strides = [1, 1]} : vector<2x128xf32> to vector<2x32xf32>
    %380 = arith.negf %379 : vector<2x32xf32>
    %381 = math.exp %380 : vector<2x32xf32>
    %cst_98 = arith.constant 1.000000e+00 : f32
    %382 = vector.broadcast %cst_98 : f32 to vector<2x32xf32>
    %383 = arith.addf %382, %381 : vector<2x32xf32>
    %384 = arith.divf %382, %383 : vector<2x32xf32>
    %385 = vector.extract_strided_slice %378 {offsets = [0, 32], sizes = [2, 32], strides = [1, 1]} : vector<2x128xf32> to vector<2x32xf32>
    %386 = arith.negf %385 : vector<2x32xf32>
    %387 = math.exp %386 : vector<2x32xf32>
    %cst_99 = arith.constant 1.000000e+00 : f32
    %388 = vector.broadcast %cst_99 : f32 to vector<2x32xf32>
    %389 = arith.addf %388, %387 : vector<2x32xf32>
    %390 = arith.divf %388, %389 : vector<2x32xf32>
    %391 = vector.extract_strided_slice %378 {offsets = [0, 64], sizes = [2, 32], strides = [1, 1]} : vector<2x128xf32> to vector<2x32xf32>
    %392 = math.tanh %391 : vector<2x32xf32>
    %393 = vector.extract_strided_slice %378 {offsets = [0, 96], sizes = [2, 32], strides = [1, 1]} : vector<2x128xf32> to vector<2x32xf32>
    %394 = arith.negf %393 : vector<2x32xf32>
    %395 = math.exp %394 : vector<2x32xf32>
    %cst_100 = arith.constant 1.000000e+00 : f32
    %396 = vector.broadcast %cst_100 : f32 to vector<2x32xf32>
    %397 = arith.addf %396, %395 : vector<2x32xf32>
    %398 = arith.divf %396, %397 : vector<2x32xf32>
    %399 = arith.mulf %390, %363 : vector<2x32xf32>
    %400 = arith.mulf %384, %392 : vector<2x32xf32>
    %401 = arith.addf %399, %400 : vector<2x32xf32>
    %402 = math.tanh %401 : vector<2x32xf32>
    %403 = arith.mulf %398, %402 : vector<2x32xf32>
    %cst_101 = arith.constant 0.000000e+00 : f32
    %404 = vector.broadcast %cst_101 : f32 to vector<2x32xf32>
    %405 = arith.maximumf %403, %404 : vector<2x32xf32>
    %406 = arith.index_cast %c2_i32_94 : i32 to index
    %c0_102 = arith.constant 0 : index
    %c0_103 = arith.constant 0 : index
    %407 = vector.load %arg6[%406, %c0_102, %c0_103] : memref<8x2x32xf32, #tpu.memory_space<vmem>>, vector<1x2x32xf32>
    %408 = vector.shape_cast %407 : vector<1x2x32xf32> to vector<2x32xf32>
    %409 = vector.shape_cast %405 : vector<2x32xf32> to vector<1x2x32xf32>
    tpu.vector_store %arg6[%406, %c0_102, %c0_103], %409 {strides = array<i32>} : memref<8x2x32xf32, #tpu.memory_space<vmem>>, vector<1x2x32xf32>,
    %c3_i32_104 = arith.constant 3 : i32
    %410 = arith.index_cast %c3_i32_104 : i32 to index
    %c0_105 = arith.constant 0 : index
    %c0_106 = arith.constant 0 : index
    %411 = vector.load %arg7[%410, %c0_105, %c0_106] : memref<8x2x32xf32, #tpu.memory_space<vmem>>, vector<1x2x32xf32>
    %412 = vector.shape_cast %411 : vector<1x2x32xf32> to vector<2x32xf32>
    %413 = tpu.concatenate %412, %403 in 1 : vector<2x32xf32>, vector<2x32xf32> -> vector<2x64xf32>
    %cst_107 = arith.constant dense<0.000000e+00> : vector<2x128xf32>
    %414 = tpu.matmul %413, %292, %cst_107 {dimension_numbers = #tpu.dot_dimension_numbers<[1], [0], [0], [1], [0, 0, 1, 1], [], []>} : vector<2x64xf32>, vector<64x128xf32>, vector<2x128xf32> -> vector<2x128xf32>
    %415 = vector.broadcast %293 : vector<1x128xf32> to vector<2x128xf32>
    %416 = arith.addf %414, %415 : vector<2x128xf32>
    %417 = vector.extract_strided_slice %416 {offsets = [0, 0], sizes = [2, 32], strides = [1, 1]} : vector<2x128xf32> to vector<2x32xf32>
    %418 = arith.negf %417 : vector<2x32xf32>
    %419 = math.exp %418 : vector<2x32xf32>
    %cst_108 = arith.constant 1.000000e+00 : f32
    %420 = vector.broadcast %cst_108 : f32 to vector<2x32xf32>
    %421 = arith.addf %420, %419 : vector<2x32xf32>
    %422 = arith.divf %420, %421 : vector<2x32xf32>
    %423 = vector.extract_strided_slice %416 {offsets = [0, 32], sizes = [2, 32], strides = [1, 1]} : vector<2x128xf32> to vector<2x32xf32>
    %424 = arith.negf %423 : vector<2x32xf32>
    %425 = math.exp %424 : vector<2x32xf32>
    %cst_109 = arith.constant 1.000000e+00 : f32
    %426 = vector.broadcast %cst_109 : f32 to vector<2x32xf32>
    %427 = arith.addf %426, %425 : vector<2x32xf32>
    %428 = arith.divf %426, %427 : vector<2x32xf32>
    %429 = vector.extract_strided_slice %416 {offsets = [0, 64], sizes = [2, 32], strides = [1, 1]} : vector<2x128xf32> to vector<2x32xf32>
    %430 = math.tanh %429 : vector<2x32xf32>
    %431 = vector.extract_strided_slice %416 {offsets = [0, 96], sizes = [2, 32], strides = [1, 1]} : vector<2x128xf32> to vector<2x32xf32>
    %432 = arith.negf %431 : vector<2x32xf32>
    %433 = math.exp %432 : vector<2x32xf32>
    %cst_110 = arith.constant 1.000000e+00 : f32
    %434 = vector.broadcast %cst_110 : f32 to vector<2x32xf32>
    %435 = arith.addf %434, %433 : vector<2x32xf32>
    %436 = arith.divf %434, %435 : vector<2x32xf32>
    %437 = arith.mulf %428, %401 : vector<2x32xf32>
    %438 = arith.mulf %422, %430 : vector<2x32xf32>
    %439 = arith.addf %437, %438 : vector<2x32xf32>
    %440 = math.tanh %439 : vector<2x32xf32>
    %441 = arith.mulf %436, %440 : vector<2x32xf32>
    %cst_111 = arith.constant 0.000000e+00 : f32
    %442 = vector.broadcast %cst_111 : f32 to vector<2x32xf32>
    %443 = arith.maximumf %441, %442 : vector<2x32xf32>
    %444 = arith.index_cast %c3_i32_104 : i32 to index
    %c0_112 = arith.constant 0 : index
    %c0_113 = arith.constant 0 : index
    %445 = vector.load %arg6[%444, %c0_112, %c0_113] : memref<8x2x32xf32, #tpu.memory_space<vmem>>, vector<1x2x32xf32>
    %446 = vector.shape_cast %445 : vector<1x2x32xf32> to vector<2x32xf32>
    %447 = vector.shape_cast %443 : vector<2x32xf32> to vector<1x2x32xf32>
    tpu.vector_store %arg6[%444, %c0_112, %c0_113], %447 {strides = array<i32>} : memref<8x2x32xf32, #tpu.memory_space<vmem>>, vector<1x2x32xf32>,
    %c4_i32_114 = arith.constant 4 : i32
    %448 = arith.index_cast %c4_i32_114 : i32 to index
    %c0_115 = arith.constant 0 : index
    %c0_116 = arith.constant 0 : index
    %449 = vector.load %arg7[%448, %c0_115, %c0_116] : memref<8x2x32xf32, #tpu.memory_space<vmem>>, vector<1x2x32xf32>
    %450 = vector.shape_cast %449 : vector<1x2x32xf32> to vector<2x32xf32>
    %451 = tpu.concatenate %450, %441 in 1 : vector<2x32xf32>, vector<2x32xf32> -> vector<2x64xf32>
    %cst_117 = arith.constant dense<0.000000e+00> : vector<2x128xf32>
    %452 = tpu.matmul %451, %292, %cst_117 {dimension_numbers = #tpu.dot_dimension_numbers<[1], [0], [0], [1], [0, 0, 1, 1], [], []>} : vector<2x64xf32>, vector<64x128xf32>, vector<2x128xf32> -> vector<2x128xf32>
    %453 = vector.broadcast %293 : vector<1x128xf32> to vector<2x128xf32>
    %454 = arith.addf %452, %453 : vector<2x128xf32>
    %455 = vector.extract_strided_slice %454 {offsets = [0, 0], sizes = [2, 32], strides = [1, 1]} : vector<2x128xf32> to vector<2x32xf32>
    %456 = arith.negf %455 : vector<2x32xf32>
    %457 = math.exp %456 : vector<2x32xf32>
    %cst_118 = arith.constant 1.000000e+00 : f32
    %458 = vector.broadcast %cst_118 : f32 to vector<2x32xf32>
    %459 = arith.addf %458, %457 : vector<2x32xf32>
    %460 = arith.divf %458, %459 : vector<2x32xf32>
    %461 = vector.extract_strided_slice %454 {offsets = [0, 32], sizes = [2, 32], strides = [1, 1]} : vector<2x128xf32> to vector<2x32xf32>
    %462 = arith.negf %461 : vector<2x32xf32>
    %463 = math.exp %462 : vector<2x32xf32>
    %cst_119 = arith.constant 1.000000e+00 : f32
    %464 = vector.broadcast %cst_119 : f32 to vector<2x32xf32>
    %465 = arith.addf %464, %463 : vector<2x32xf32>
    %466 = arith.divf %464, %465 : vector<2x32xf32>
    %467 = vector.extract_strided_slice %454 {offsets = [0, 64], sizes = [2, 32], strides = [1, 1]} : vector<2x128xf32> to vector<2x32xf32>
    %468 = math.tanh %467 : vector<2x32xf32>
    %469 = vector.extract_strided_slice %454 {offsets = [0, 96], sizes = [2, 32], strides = [1, 1]} : vector<2x128xf32> to vector<2x32xf32>
    %470 = arith.negf %469 : vector<2x32xf32>
    %471 = math.exp %470 : vector<2x32xf32>
    %cst_120 = arith.constant 1.000000e+00 : f32
    %472 = vector.broadcast %cst_120 : f32 to vector<2x32xf32>
    %473 = arith.addf %472, %471 : vector<2x32xf32>
    %474 = arith.divf %472, %473 : vector<2x32xf32>
    %475 = arith.mulf %466, %439 : vector<2x32xf32>
    %476 = arith.mulf %460, %468 : vector<2x32xf32>
    %477 = arith.addf %475, %476 : vector<2x32xf32>
    %478 = math.tanh %477 : vector<2x32xf32>
    %479 = arith.mulf %474, %478 : vector<2x32xf32>
    %cst_121 = arith.constant 0.000000e+00 : f32
    %480 = vector.broadcast %cst_121 : f32 to vector<2x32xf32>
    %481 = arith.maximumf %479, %480 : vector<2x32xf32>
    %482 = arith.index_cast %c4_i32_114 : i32 to index
    %c0_122 = arith.constant 0 : index
    %c0_123 = arith.constant 0 : index
    %483 = vector.load %arg6[%482, %c0_122, %c0_123] : memref<8x2x32xf32, #tpu.memory_space<vmem>>, vector<1x2x32xf32>
    %484 = vector.shape_cast %483 : vector<1x2x32xf32> to vector<2x32xf32>
    %485 = vector.shape_cast %481 : vector<2x32xf32> to vector<1x2x32xf32>
    tpu.vector_store %arg6[%482, %c0_122, %c0_123], %485 {strides = array<i32>} : memref<8x2x32xf32, #tpu.memory_space<vmem>>, vector<1x2x32xf32>,
    %c5_i32_124 = arith.constant 5 : i32
    %486 = arith.index_cast %c5_i32_124 : i32 to index
    %c0_125 = arith.constant 0 : index
    %c0_126 = arith.constant 0 : index
    %487 = vector.load %arg7[%486, %c0_125, %c0_126] : memref<8x2x32xf32, #tpu.memory_space<vmem>>, vector<1x2x32xf32>
    %488 = vector.shape_cast %487 : vector<1x2x32xf32> to vector<2x32xf32>
    %489 = tpu.concatenate %488, %479 in 1 : vector<2x32xf32>, vector<2x32xf32> -> vector<2x64xf32>
    %cst_127 = arith.constant dense<0.000000e+00> : vector<2x128xf32>
    %490 = tpu.matmul %489, %292, %cst_127 {dimension_numbers = #tpu.dot_dimension_numbers<[1], [0], [0], [1], [0, 0, 1, 1], [], []>} : vector<2x64xf32>, vector<64x128xf32>, vector<2x128xf32> -> vector<2x128xf32>
    %491 = vector.broadcast %293 : vector<1x128xf32> to vector<2x128xf32>
    %492 = arith.addf %490, %491 : vector<2x128xf32>
    %493 = vector.extract_strided_slice %492 {offsets = [0, 0], sizes = [2, 32], strides = [1, 1]} : vector<2x128xf32> to vector<2x32xf32>
    %494 = arith.negf %493 : vector<2x32xf32>
    %495 = math.exp %494 : vector<2x32xf32>
    %cst_128 = arith.constant 1.000000e+00 : f32
    %496 = vector.broadcast %cst_128 : f32 to vector<2x32xf32>
    %497 = arith.addf %496, %495 : vector<2x32xf32>
    %498 = arith.divf %496, %497 : vector<2x32xf32>
    %499 = vector.extract_strided_slice %492 {offsets = [0, 32], sizes = [2, 32], strides = [1, 1]} : vector<2x128xf32> to vector<2x32xf32>
    %500 = arith.negf %499 : vector<2x32xf32>
    %501 = math.exp %500 : vector<2x32xf32>
    %cst_129 = arith.constant 1.000000e+00 : f32
    %502 = vector.broadcast %cst_129 : f32 to vector<2x32xf32>
    %503 = arith.addf %502, %501 : vector<2x32xf32>
    %504 = arith.divf %502, %503 : vector<2x32xf32>
    %505 = vector.extract_strided_slice %492 {offsets = [0, 64], sizes = [2, 32], strides = [1, 1]} : vector<2x128xf32> to vector<2x32xf32>
    %506 = math.tanh %505 : vector<2x32xf32>
    %507 = vector.extract_strided_slice %492 {offsets = [0, 96], sizes = [2, 32], strides = [1, 1]} : vector<2x128xf32> to vector<2x32xf32>
    %508 = arith.negf %507 : vector<2x32xf32>
    %509 = math.exp %508 : vector<2x32xf32>
    %cst_130 = arith.constant 1.000000e+00 : f32
    %510 = vector.broadcast %cst_130 : f32 to vector<2x32xf32>
    %511 = arith.addf %510, %509 : vector<2x32xf32>
    %512 = arith.divf %510, %511 : vector<2x32xf32>
    %513 = arith.mulf %504, %477 : vector<2x32xf32>
    %514 = arith.mulf %498, %506 : vector<2x32xf32>
    %515 = arith.addf %513, %514 : vector<2x32xf32>
    %516 = math.tanh %515 : vector<2x32xf32>
    %517 = arith.mulf %512, %516 : vector<2x32xf32>
    %cst_131 = arith.constant 0.000000e+00 : f32
    %518 = vector.broadcast %cst_131 : f32 to vector<2x32xf32>
    %519 = arith.maximumf %517, %518 : vector<2x32xf32>
    %520 = arith.index_cast %c5_i32_124 : i32 to index
    %c0_132 = arith.constant 0 : index
    %c0_133 = arith.constant 0 : index
    %521 = vector.load %arg6[%520, %c0_132, %c0_133] : memref<8x2x32xf32, #tpu.memory_space<vmem>>, vector<1x2x32xf32>
    %522 = vector.shape_cast %521 : vector<1x2x32xf32> to vector<2x32xf32>
    %523 = vector.shape_cast %519 : vector<2x32xf32> to vector<1x2x32xf32>
    tpu.vector_store %arg6[%520, %c0_132, %c0_133], %523 {strides = array<i32>} : memref<8x2x32xf32, #tpu.memory_space<vmem>>, vector<1x2x32xf32>,
    %c6_i32_134 = arith.constant 6 : i32
    %524 = arith.index_cast %c6_i32_134 : i32 to index
    %c0_135 = arith.constant 0 : index
    %c0_136 = arith.constant 0 : index
    %525 = vector.load %arg7[%524, %c0_135, %c0_136] : memref<8x2x32xf32, #tpu.memory_space<vmem>>, vector<1x2x32xf32>
    %526 = vector.shape_cast %525 : vector<1x2x32xf32> to vector<2x32xf32>
    %527 = tpu.concatenate %526, %517 in 1 : vector<2x32xf32>, vector<2x32xf32> -> vector<2x64xf32>
    %cst_137 = arith.constant dense<0.000000e+00> : vector<2x128xf32>
    %528 = tpu.matmul %527, %292, %cst_137 {dimension_numbers = #tpu.dot_dimension_numbers<[1], [0], [0], [1], [0, 0, 1, 1], [], []>} : vector<2x64xf32>, vector<64x128xf32>, vector<2x128xf32> -> vector<2x128xf32>
    %529 = vector.broadcast %293 : vector<1x128xf32> to vector<2x128xf32>
    %530 = arith.addf %528, %529 : vector<2x128xf32>
    %531 = vector.extract_strided_slice %530 {offsets = [0, 0], sizes = [2, 32], strides = [1, 1]} : vector<2x128xf32> to vector<2x32xf32>
    %532 = arith.negf %531 : vector<2x32xf32>
    %533 = math.exp %532 : vector<2x32xf32>
    %cst_138 = arith.constant 1.000000e+00 : f32
    %534 = vector.broadcast %cst_138 : f32 to vector<2x32xf32>
    %535 = arith.addf %534, %533 : vector<2x32xf32>
    %536 = arith.divf %534, %535 : vector<2x32xf32>
    %537 = vector.extract_strided_slice %530 {offsets = [0, 32], sizes = [2, 32], strides = [1, 1]} : vector<2x128xf32> to vector<2x32xf32>
    %538 = arith.negf %537 : vector<2x32xf32>
    %539 = math.exp %538 : vector<2x32xf32>
    %cst_139 = arith.constant 1.000000e+00 : f32
    %540 = vector.broadcast %cst_139 : f32 to vector<2x32xf32>
    %541 = arith.addf %540, %539 : vector<2x32xf32>
    %542 = arith.divf %540, %541 : vector<2x32xf32>
    %543 = vector.extract_strided_slice %530 {offsets = [0, 64], sizes = [2, 32], strides = [1, 1]} : vector<2x128xf32> to vector<2x32xf32>
    %544 = math.tanh %543 : vector<2x32xf32>
    %545 = vector.extract_strided_slice %530 {offsets = [0, 96], sizes = [2, 32], strides = [1, 1]} : vector<2x128xf32> to vector<2x32xf32>
    %546 = arith.negf %545 : vector<2x32xf32>
    %547 = math.exp %546 : vector<2x32xf32>
    %cst_140 = arith.constant 1.000000e+00 : f32
    %548 = vector.broadcast %cst_140 : f32 to vector<2x32xf32>
    %549 = arith.addf %548, %547 : vector<2x32xf32>
    %550 = arith.divf %548, %549 : vector<2x32xf32>
    %551 = arith.mulf %542, %515 : vector<2x32xf32>
    %552 = arith.mulf %536, %544 : vector<2x32xf32>
    %553 = arith.addf %551, %552 : vector<2x32xf32>
    %554 = math.tanh %553 : vector<2x32xf32>
    %555 = arith.mulf %550, %554 : vector<2x32xf32>
    %cst_141 = arith.constant 0.000000e+00 : f32
    %556 = vector.broadcast %cst_141 : f32 to vector<2x32xf32>
    %557 = arith.maximumf %555, %556 : vector<2x32xf32>
    %558 = arith.index_cast %c6_i32_134 : i32 to index
    %c0_142 = arith.constant 0 : index
    %c0_143 = arith.constant 0 : index
    %559 = vector.load %arg6[%558, %c0_142, %c0_143] : memref<8x2x32xf32, #tpu.memory_space<vmem>>, vector<1x2x32xf32>
    %560 = vector.shape_cast %559 : vector<1x2x32xf32> to vector<2x32xf32>
    %561 = vector.shape_cast %557 : vector<2x32xf32> to vector<1x2x32xf32>
    tpu.vector_store %arg6[%558, %c0_142, %c0_143], %561 {strides = array<i32>} : memref<8x2x32xf32, #tpu.memory_space<vmem>>, vector<1x2x32xf32>,
    %c7_i32_144 = arith.constant 7 : i32
    %562 = arith.index_cast %c7_i32_144 : i32 to index
    %c0_145 = arith.constant 0 : index
    %c0_146 = arith.constant 0 : index
    %563 = vector.load %arg7[%562, %c0_145, %c0_146] : memref<8x2x32xf32, #tpu.memory_space<vmem>>, vector<1x2x32xf32>
    %564 = vector.shape_cast %563 : vector<1x2x32xf32> to vector<2x32xf32>
    %565 = tpu.concatenate %564, %555 in 1 : vector<2x32xf32>, vector<2x32xf32> -> vector<2x64xf32>
    %cst_147 = arith.constant dense<0.000000e+00> : vector<2x128xf32>
    %566 = tpu.matmul %565, %292, %cst_147 {dimension_numbers = #tpu.dot_dimension_numbers<[1], [0], [0], [1], [0, 0, 1, 1], [], []>} : vector<2x64xf32>, vector<64x128xf32>, vector<2x128xf32> -> vector<2x128xf32>
    %567 = vector.broadcast %293 : vector<1x128xf32> to vector<2x128xf32>
    %568 = arith.addf %566, %567 : vector<2x128xf32>
    %569 = vector.extract_strided_slice %568 {offsets = [0, 0], sizes = [2, 32], strides = [1, 1]} : vector<2x128xf32> to vector<2x32xf32>
    %570 = arith.negf %569 : vector<2x32xf32>
    %571 = math.exp %570 : vector<2x32xf32>
    %cst_148 = arith.constant 1.000000e+00 : f32
    %572 = vector.broadcast %cst_148 : f32 to vector<2x32xf32>
    %573 = arith.addf %572, %571 : vector<2x32xf32>
    %574 = arith.divf %572, %573 : vector<2x32xf32>
    %575 = vector.extract_strided_slice %568 {offsets = [0, 32], sizes = [2, 32], strides = [1, 1]} : vector<2x128xf32> to vector<2x32xf32>
    %576 = arith.negf %575 : vector<2x32xf32>
    %577 = math.exp %576 : vector<2x32xf32>
    %cst_149 = arith.constant 1.000000e+00 : f32
    %578 = vector.broadcast %cst_149 : f32 to vector<2x32xf32>
    %579 = arith.addf %578, %577 : vector<2x32xf32>
    %580 = arith.divf %578, %579 : vector<2x32xf32>
    %581 = vector.extract_strided_slice %568 {offsets = [0, 64], sizes = [2, 32], strides = [1, 1]} : vector<2x128xf32> to vector<2x32xf32>
    %582 = math.tanh %581 : vector<2x32xf32>
    %583 = vector.extract_strided_slice %568 {offsets = [0, 96], sizes = [2, 32], strides = [1, 1]} : vector<2x128xf32> to vector<2x32xf32>
    %584 = arith.negf %583 : vector<2x32xf32>
    %585 = math.exp %584 : vector<2x32xf32>
    %cst_150 = arith.constant 1.000000e+00 : f32
    %586 = vector.broadcast %cst_150 : f32 to vector<2x32xf32>
    %587 = arith.addf %586, %585 : vector<2x32xf32>
    %588 = arith.divf %586, %587 : vector<2x32xf32>
    %589 = arith.mulf %580, %553 : vector<2x32xf32>
    %590 = arith.mulf %574, %582 : vector<2x32xf32>
    %591 = arith.addf %589, %590 : vector<2x32xf32>
    %592 = math.tanh %591 : vector<2x32xf32>
    %593 = arith.mulf %588, %592 : vector<2x32xf32>
    %cst_151 = arith.constant 0.000000e+00 : f32
    %594 = vector.broadcast %cst_151 : f32 to vector<2x32xf32>
    %595 = arith.maximumf %593, %594 : vector<2x32xf32>
    %596 = arith.index_cast %c7_i32_144 : i32 to index
    %c0_152 = arith.constant 0 : index
    %c0_153 = arith.constant 0 : index
    %597 = vector.load %arg6[%596, %c0_152, %c0_153] : memref<8x2x32xf32, #tpu.memory_space<vmem>>, vector<1x2x32xf32>
    %598 = vector.shape_cast %597 : vector<1x2x32xf32> to vector<2x32xf32>
    %599 = vector.shape_cast %595 : vector<2x32xf32> to vector<1x2x32xf32>
    tpu.vector_store %arg6[%596, %c0_152, %c0_153], %599 {strides = array<i32>} : memref<8x2x32xf32, #tpu.memory_space<vmem>>, vector<1x2x32xf32>,
    %c8_i32_154 = arith.constant 8 : i32
    return
  }
  func.func @transform_0(%arg0: i32) -> (i32, i32, i32) {
    %c0_i32 = arith.constant 0 : i32
    %c0_i32_0 = arith.constant 0 : i32
    %c0_i32_1 = arith.constant 0 : i32
    %c0_i32_2 = arith.constant 0 : i32
    return %c0_i32, %c0_i32_0, %c0_i32_1 : i32, i32, i32
  }
  func.func @transform_1(%arg0: i32) -> (i32, i32) {
    %c0_i32 = arith.constant 0 : i32
    %c0_i32_0 = arith.constant 0 : i32
    %c0_i32_1 = arith.constant 0 : i32
    return %c0_i32, %c0_i32_0 : i32, i32
  }
  func.func @transform_2(%arg0: i32) -> (i32, i32) {
    %c0_i32 = arith.constant 0 : i32
    %c0_i32_0 = arith.constant 0 : i32
    %c0_i32_1 = arith.constant 0 : i32
    return %c0_i32, %c0_i32_0 : i32, i32
  }
  func.func @transform_3(%arg0: i32) -> (i32, i32) {
    %c0_i32 = arith.constant 0 : i32
    %c0_i32_0 = arith.constant 0 : i32
    %c0_i32_1 = arith.constant 0 : i32
    return %c0_i32, %c0_i32_0 : i32, i32
  }
  func.func @transform_4(%arg0: i32) -> (i32, i32) {
    %c0_i32 = arith.constant 0 : i32
    %c0_i32_0 = arith.constant 0 : i32
    %c0_i32_1 = arith.constant 0 : i32
    return %c0_i32, %c0_i32_0 : i32, i32
  }
  func.func @transform_5(%arg0: i32) -> (i32, i32, i32) {
    %c0_i32 = arith.constant 0 : i32
    %c0_i32_0 = arith.constant 0 : i32
    %c0_i32_1 = arith.constant 0 : i32
    %c0_i32_2 = arith.constant 0 : i32
    return %c0_i32, %c0_i32_0, %c0_i32_1 : i32, i32, i32
  }
}

</mosaic_0001>

<bundles_post_ra>
// kernel: tpu_custom_call.1
= control target key start
LH: loop header
LB: loop body
LE: loop exit
PB: predicated region body
PF: predicated region fallthrough
CT: control target
= control target key end

     0   :  { %10 = vsyncpa [#allocation4], 0  ;;  %s3168_s0 = inlined_call_operand.hbm [shape: f32[8,2,16], index: 0, kind: input, shape index: {}]   ;;  %s3169_s1 = inlined_call_operand.hbm [shape: f32[48,128], index: 1, kind: input, shape index: {}]   ;;  %s3170_s2 = inlined_call_operand.vmem [shape: f32[1,128], index: 2, kind: input, shape index: {}]   ;;  %s3171_s3 = inlined_call_operand.hbm [shape: f32[64,128], index: 3, kind: input, shape index: {}]   ;;  %s3172_s4 = inlined_call_operand.vmem [shape: f32[1,128], index: 4, kind: input, shape index: {}]   ;;  %s3173_s5 = inlined_call_operand.hbm [shape: f32[8,2,32], index: 5, kind: output, shape index: {}]  }
   0x1   :  { %11 = vsyncpa [#allocation7], 0 }
   0x2   :  { %12 = vsyncpa [#allocation5], 0  ;;  %s2692_s18 = smov [#allocation6]   ;;  %s2598_s22 = scalar_lea.hbm %s3169_s1, 768 }
   0x3   :  { %s30_s19 = sshll.u32 %s2692_s18, 4  ;;  %p2599_p0 = scmp.ne.s32.totalorder %s3169_s1, %s2598_s22  ;;  %s31_s19 = int_to_ptr.vmem [resolvable:$true] %s30_s19 }
   0x4   :  { %p2602_p1 = scmp.lt.u32.totalorder %s2598_s22, %s3169_s1 }
   0x6   :  { %p2604_p2 = pnand %p2602_p1, %p2599_p0 }
   0x8   :  { %2607 = shalt.err (!%p2604_p2)
}
   0x9   :  { %s2608_s27 = scalar_lea.vmem %s31_s19, 768  ;;  %p2613_p4 = scmp.lt.s32.totalorder %s31_s19, %s31_s19 }
   0xa   :  { %p2609_p3 = scmp.ne.s32.totalorder %s31_s19, %s2608_s27  ;;  %p2614_p5 = scmp.lt.s32.totalorder %s2608_s27, %s2608_s27 }
   0xc   :  { %p2615_p6 = por %p2614_p5, %p2613_p4 }
   0xe   :  { %p2616_p7 = pnand %p2615_p6, %p2609_p3 }
  0x10   :  { %2619 = shalt.err (!%p2616_p7)
}
  0x11   :  { %s2693_s28 = smov 128   ;;  %s2694_s29 = smov 8  }
  0x12   :  { %36 = dma.hbm_to_vmem [thread:$0]  %s3169_s1, 768, %s31_s19, [#allocation7], %s2693_s28, %s2693_s28, %s2694_s29  }
  0x13   :  { %s2695_s7 = smov [#allocation3]   ;;  %s2620_s11 = scalar_lea.hbm %s3168_s0, 256 }
  0x14   :  { %s18_s8 = sshll.u32 %s2695_s7, 4  ;;  %p2621_p8 = scmp.ne.s32.totalorder %s3168_s0, %s2620_s11  ;;  %s19_s8 = int_to_ptr.vmem [resolvable:$true] %s18_s8 }
  0x15   :  { %p2624_p9 = scmp.lt.u32.totalorder %s2620_s11, %s3168_s0 }
  0x17   :  { %p2626_p10 = pnand %p2624_p9, %p2621_p8 }
  0x19   :  { %2629 = shalt.err (!%p2626_p10)
}
  0x1a   :  { %s2630_s16 = scalar_lea.vmem %s19_s8, 256  ;;  %p2635_p12 = scmp.lt.s32.totalorder %s19_s8, %s19_s8 }
  0x1b   :  { %p2631_p11 = scmp.ne.s32.totalorder %s19_s8, %s2630_s16  ;;  %p2636_p13 = scmp.lt.s32.totalorder %s2630_s16, %s2630_s16 }
  0x1d   :  { %p2637_p0 = por %p2636_p13, %p2635_p12 }
  0x1f   :  { %p2638_p1 = pnand %p2637_p0, %p2631_p11 }
  0x21   :  { %2641 = shalt.err (!%p2638_p1)
}
  0x22   :  { %s2696_s1 = smov 32   ;;  %s2697_s17 = smov 2  }
  0x23   :  { %24 = dma.hbm_to_vmem [thread:$0]  %s3168_s0, 256, %s19_s8, [#allocation4], %s2696_s1, %s2696_s1, %s2697_s17  }
  0x24   :  { %s2698_s20 = smov [#allocation8]   ;;  %s2642_s24 = scalar_lea.hbm %s3171_s3, 1024 }
  0x25   :  { %s44_s21 = sshll.u32 %s2698_s20, 4  ;;  %p2643_p2 = scmp.ne.s32.totalorder %s3171_s3, %s2642_s24  ;;  %s45_s21 = int_to_ptr.vmem [resolvable:$true] %s44_s21 }
  0x26   :  { %p2646_p3 = scmp.lt.u32.totalorder %s2642_s24, %s3171_s3 }
  0x28   :  { %p2648_p4 = pnand %p2646_p3, %p2643_p2 }
  0x2a   :  { %2651 = shalt.err (!%p2648_p4)
}
  0x2b   :  { %s2652_s6 = scalar_lea.vmem %s45_s21, 1024  ;;  %p2657_p6 = scmp.lt.s32.totalorder %s45_s21, %s45_s21 }
  0x2c   :  { %p2653_p5 = scmp.ne.s32.totalorder %s45_s21, %s2652_s6  ;;  %p2658_p7 = scmp.lt.s32.totalorder %s2652_s6, %s2652_s6 }
  0x2e   :  { %p2659_p8 = por %p2658_p7, %p2657_p6 }
  0x30   :  { %p2660_p9 = pnand %p2659_p8, %p2653_p5 }
  0x32   :  { %2663 = shalt.err (!%p2660_p9)
}
  0x33   :  { %50 = dma.hbm_to_vmem [thread:$0]  %s3171_s3, 1024, %s45_s21, [#allocation7], %s2693_s28, %s2693_s28, %s2694_s29  }
  0x34   :  { %2686 = dma.done.wait [#allocation4], 256  }
  0x35   :  { %2687 = vsyncadd [#allocation4], 4294967040 }
  0x36   :  { %2688 = dma.done.wait [#allocation7], 1792  }
  0x37   :  { %2689 = vsyncadd [#allocation7], 4294965504  ;;  %v2699_v0 = vmov 0.0|0.0   ;;  %vm2700_vm0 = vmmov 0   ;;  %v2701_v1 = vmov 0.0   ;;  %v62_v2 = vld [vmem:[#allocation6] sm:$0xff] }
  0x38   :  { %2289 = vmatprep.subr.bf16.mxu0 %v2699_v0  ;;  %2029 = vmatprep.mubr.msk.f32.mxu0 %vm2700_vm0, %v2701_v1  ;;  %v63_v3 = vld [vmem:[#allocation6 + $0x8] sm:$0xff]  ;;  %v64_v4 = vld [vmem:[#allocation6 + $0x10] sm:$0xff]  ;;  %v65_v6 = vld [vmem:[#allocation6 + $0x18] sm:$0xff]  ;;  %vm70_vm1 = vcmask 130048   ;;  %vm78_vm2 = vcmask 392192   ;;  %s2702_s29 = smov 64  }
  0x39   :  { %2298 = vmatprep.subr.bf16.mxu1 %v2699_v0  ;;  %2044 = vmatprep.mubr.msk.f32.mxu1 %vm2700_vm0, %v2701_v1  ;;  %v2786_v5 = vpack.c.bf16 %v63_v3, %v62_v2  ;;  %v2789_v7 = vpack.c.bf16 %v65_v6, %v64_v4  ;;  %v66_v8 = vld [vmem:[#allocation6 + $0x20] sm:$0xff]  ;;  %v67_v9 = vld [vmem:[#allocation6 + $0x28] sm:$0xff]  ;;  %v69_v11 = vld [vmem:[#allocation3] sm:$0x3]  ;;  %vm180_vm3 = vcmask 254976   ;;  %vm955_vm4 = vcmask 261120  }
  0x3a   :  { %v2795_v10 = vpack.c.bf16 %v67_v9, %v66_v8  ;;  %v71_v12 = vsel %vm70_vm1, %v69_v11, 0.0  ;;  %v2817_v13 = vld [vmem:[%s3170_s2] ss:$0 sm:$0xff]  ;;  %s2703_s2 = smov 48   ;;  %v183_v30 = vld [vmem:[#allocation3 + $0x2] sm:$0x3] }
  0x3b   :  { %2291 = vmatpush3.bf16.msra.mxu0 %v2786_v5  ;;  %2300 = vmatpush3.bf16.msra.mxu1 %v2786_v5  ;;  %v292_v49 = vld [vmem:[#allocation3 + $0x4] sm:$0x3]  ;;  %v401_v8 = vld [vmem:[#allocation3 + $0x6] sm:$0x3]  ;;  %vm963_vm5 = vcmask 523264  }
  0x3c   :  { %2292 = vmatprep.subr.bf16.mxu0 %v2699_v0  ;;  %2301 = vmatprep.subr.bf16.mxu1 %v2699_v0 }
  0x3f   :  { %2294 = vmatpush3.bf16.msra.mxu0 %v2789_v7  ;;  %2303 = vmatpush3.bf16.msra.mxu1 %v2789_v7 }
  0x40   :  { %2295 = vmatprep.subr.bf16.mxu0 %v2699_v0  ;;  %2304 = vmatprep.subr.bf16.mxu1 %v2699_v0 }
  0x43   :  { %2297 = vmatpush3.bf16.msra.mxu0 %v2795_v10  ;;  %2306 = vmatpush3.bf16.msra.mxu1 %v2795_v10 }
  0x44   :  { %2307 = vmatprep.subr.bf16.mxu0 %v2699_v0  ;;  %2316 = vmatprep.subr.bf16.mxu1 %v2699_v0 }
  0x46   :  { %2030 = vmatmul.mubr.msk.f32.vlgmr.msra.gmra.mrb[0].mxu0 %vm78_vm2, %v71_v12 }
  0x47   :  { %2309 = vmatpush3.bf16.msra.mxu0 %v2786_v5  ;;  %2059 = vmatprep.mubr.msk.f32.mxu0 %vm2700_vm0, %v2701_v1 }
  0x48   :  { %2310 = vmatprep.subr.bf16.mxu0 %v2699_v0 }
  0x4b   :  { %2312 = vmatpush3.bf16.msra.mxu0 %v2789_v7 }
  0x4c   :  { %2313 = vmatprep.subr.bf16.mxu0 %v2699_v0 }
  0x4f   :  { %2315 = vmatpush3.bf16.msra.mxu0 %v2795_v10 }
  0x50   :  { %2325 = vmatprep.subr.bf16.mxu0 %v2699_v0 }
 0x119   :  { %v148_v14 = vpop.f32.mrb[0].mxu0 }
 0x11a   :  { %v149_v15 = vadd.f32 %v2817_v13, %v148_v14  ;;  %v2031_v16 = vpop.f32.mrb[1].mxu0 }
 0x11c   :  { %2470 = vtanh.f32 %v149_v15  ;;  %v1857_v18 = vmul.f32 -1.442695, %v149_v15 }
 0x11e   :  { %2472 = vpow2.f32 %v1857_v18 }
 0x126   :  { %v2471_v17 = vpop.eup %2470 }
 0x127   :  { %161 = vrot.lane.b32.xlu0 %v2471_v17, %s2702_s29 }
 0x128   :  { %v2473_v19 = vpop.eup %2472 }
 0x129   :  { %v155_v20 = vadd.f32 1.0, %v2473_v19 }
 0x12b   :  { %2474 = vrcp.f32 %v155_v20 }
 0x135   :  { %v2475_v21 = vpop.eup %2474 }
 0x136   :  { %v159_v24 = vmul.f32 0.0, %v2475_v21 }
 0x199   :  { %v162_v22 = vpop.permute.xlu0 %161 }
 0x19a   :  { %v164_v23 = vmul.f32 %v2475_v21, %v162_v22 }
 0x19c   :  { %166 = vrot.lane.b32.xlu0 %v164_v23, %s2696_s1 }
 0x20e   :  { %v167_v25 = vpop.permute.xlu0 %166 }
 0x20f   :  { %v169_v26 = vadd.f32 %v167_v25, %v159_v24 }
 0x211   :  { %2476 = vtanh.f32 %v169_v26 }
 0x21b   :  { %v2477_v27 = vpop.eup %2476 }
 0x21c   :  { %172 = vrot.lane.b32.xlu1 %v2477_v27, %s2702_s29 }
 0x28e   :  { %v173_v28 = vpop.permute.xlu1 %172 }
 0x28f   :  { %v2823_v29 = vmul.f32 %v2475_v21, %v173_v28 }
 0x291   :  { %184 = vrot.lane.b32.xlu1 %v2823_v29, %s2703_s2 }
 0x303   :  { %v185_v31 = vpop.permute.xlu1 %184 }
 0x304   :  { %v187_v32 = vsel %vm70_vm1, %v183_v30, %v185_v31  ;;  %v510_v30 = vld [vmem:[#allocation3 + $0x8] sm:$0x3] }
 0x305   :  { %2045 = vmatmul.mubr.msk.f32.vlgmr.msra.gmra.mrb[0].mxu1 %vm78_vm2, %v187_v32 }
 0x306   :  { %2318 = vmatpush3.bf16.msra.mxu1 %v2786_v5  ;;  %2074 = vmatprep.mubr.msk.f32.mxu1 %vm2700_vm0, %v2701_v1 }
 0x307   :  { %2319 = vmatprep.subr.bf16.mxu1 %v2699_v0 }
 0x30a   :  { %2321 = vmatpush3.bf16.msra.mxu1 %v2789_v7 }
 0x30b   :  { %2322 = vmatprep.subr.bf16.mxu1 %v2699_v0 }
 0x30e   :  { %2324 = vmatpush3.bf16.msra.mxu1 %v2795_v10 }
 0x30f   :  { %2334 = vmatprep.subr.bf16.mxu1 %v2699_v0 }
 0x3d8   :  { %v257_v33 = vpop.f32.mrb[0].mxu1 }
 0x3d9   :  { %v258_v34 = vadd.f32 %v2817_v13, %v257_v33  ;;  %v2046_v35 = vpop.f32.mrb[1].mxu1 }
 0x3db   :  { %2478 = vtanh.f32 %v258_v34  ;;  %v1859_v37 = vmul.f32 -1.442695, %v258_v34 }
 0x3dd   :  { %2480 = vpow2.f32 %v1859_v37 }
 0x3e5   :  { %v2479_v36 = vpop.eup %2478 }
 0x3e6   :  { %270 = vrot.lane.b32.xlu0 %v2479_v36, %s2702_s29 }
 0x3e7   :  { %v2481_v38 = vpop.eup %2480 }
 0x3e8   :  { %v264_v39 = vadd.f32 1.0, %v2481_v38 }
 0x3ea   :  { %2482 = vrcp.f32 %v264_v39 }
 0x3f4   :  { %v2483_v40 = vpop.eup %2482 }
 0x3f5   :  { %v268_v43 = vmul.f32 %v2483_v40, %v169_v26 }
 0x458   :  { %v271_v41 = vpop.permute.xlu0 %270 }
 0x459   :  { %v273_v42 = vmul.f32 %v2483_v40, %v271_v41 }
 0x45b   :  { %275 = vrot.lane.b32.xlu1 %v273_v42, %s2696_s1 }
 0x4cd   :  { %v276_v44 = vpop.permute.xlu1 %275 }
 0x4ce   :  { %v278_v45 = vadd.f32 %v276_v44, %v268_v43 }
 0x4d0   :  { %2484 = vtanh.f32 %v278_v45 }
 0x4da   :  { %v2485_v46 = vpop.eup %2484 }
 0x4db   :  { %281 = vrot.lane.b32.xlu0 %v2485_v46, %s2702_s29 }
 0x54d   :  { %v282_v47 = vpop.permute.xlu0 %281 }
 0x54e   :  { %v2841_v48 = vmul.f32 %v2483_v40, %v282_v47 }
 0x550   :  { %293 = vrot.lane.b32.xlu1 %v2841_v48, %s2703_s2 }
 0x5c2   :  { %v294_v50 = vpop.permute.xlu1 %293 }
 0x5c3   :  { %v296_v51 = vsel %vm70_vm1, %v292_v49, %v294_v50  ;;  %v619_v50 = vld [vmem:[#allocation3 + $0xa] sm:$0x3] }
 0x5c4   :  { %2060 = vmatmul.mubr.msk.f32.vlgmr.msra.gmra.mrb[2].mxu0 %vm78_vm2, %v296_v51 }
 0x5c5   :  { %2327 = vmatpush3.bf16.msra.mxu0 %v2786_v5  ;;  %2089 = vmatprep.mubr.msk.f32.mxu0 %vm2700_vm0, %v2701_v1 }
 0x5c6   :  { %2328 = vmatprep.subr.bf16.mxu0 %v2699_v0 }
 0x5c9   :  { %2330 = vmatpush3.bf16.msra.mxu0 %v2789_v7 }
 0x5ca   :  { %2331 = vmatprep.subr.bf16.mxu0 %v2699_v0 }
 0x5cd   :  { %2333 = vmatpush3.bf16.msra.mxu0 %v2795_v10 }
 0x5ce   :  { %2343 = vmatprep.subr.bf16.mxu0 %v2699_v0 }
 0x697   :  { %v366_v52 = vpop.f32.mrb[2].mxu0 }
 0x698   :  { %v367_v53 = vadd.f32 %v2817_v13, %v366_v52  ;;  %v2061_v54 = vpop.f32.mrb[3].mxu0 }
 0x69a   :  { %2486 = vtanh.f32 %v367_v53  ;;  %v1861_v56 = vmul.f32 -1.442695, %v367_v53 }
 0x69c   :  { %2488 = vpow2.f32 %v1861_v56 }
 0x6a4   :  { %v2487_v55 = vpop.eup %2486 }
 0x6a5   :  { %379 = vrot.lane.b32.xlu0 %v2487_v55, %s2702_s29 }
 0x6a6   :  { %v2489_v57 = vpop.eup %2488 }
 0x6a7   :  { %v373_v58 = vadd.f32 1.0, %v2489_v57 }
 0x6a9   :  { %2490 = vrcp.f32 %v373_v58 }
 0x6b3   :  { %v2491_v59 = vpop.eup %2490 }
 0x6b4   :  { %v377_v62 = vmul.f32 %v2491_v59, %v278_v45 }
 0x717   :  { %v380_v60 = vpop.permute.xlu0 %379 }
 0x718   :  { %v382_v61 = vmul.f32 %v2491_v59, %v380_v60 }
 0x71a   :  { %384 = vrot.lane.b32.xlu1 %v382_v61, %s2696_s1 }
 0x78c   :  { %v385_v63 = vpop.permute.xlu1 %384 }
 0x78d   :  { %v387_v2 = vadd.f32 %v385_v63, %v377_v62 }
 0x78f   :  { %2492 = vtanh.f32 %v387_v2 }
 0x799   :  { %v2493_v3 = vpop.eup %2492 }
 0x79a   :  { %390 = vrot.lane.b32.xlu0 %v2493_v3, %s2702_s29 }
 0x80c   :  { %v391_v4 = vpop.permute.xlu0 %390 }
 0x80d   :  { %v2859_v6 = vmul.f32 %v2491_v59, %v391_v4 }
 0x80f   :  { %402 = vrot.lane.b32.xlu1 %v2859_v6, %s2703_s2 }
 0x881   :  { %v403_v9 = vpop.permute.xlu1 %402 }
 0x882   :  { %v405_v11 = vsel %vm70_vm1, %v401_v8, %v403_v9  ;;  %v945_v8 = vld [vmem:[#allocation8] sm:$0xff]  ;;  %v946_v9 = vld [vmem:[#allocation8 + $0x8] sm:$0xff] }
 0x883   :  { %2075 = vmatmul.mubr.msk.f32.vlgmr.msra.gmra.mrb[2].mxu1 %vm78_vm2, %v405_v11  ;;  %v728_v11 = vld [vmem:[#allocation3 + $0xc] sm:$0x3] }
 0x884   :  { %2336 = vmatpush3.bf16.msra.mxu1 %v2786_v5  ;;  %2104 = vmatprep.mubr.msk.f32.mxu1 %vm2700_vm0, %v2701_v1 }
 0x885   :  { %2337 = vmatprep.subr.bf16.mxu1 %v2699_v0 }
 0x888   :  { %2339 = vmatpush3.bf16.msra.mxu1 %v2789_v7 }
 0x889   :  { %2340 = vmatprep.subr.bf16.mxu1 %v2699_v0 }
 0x88c   :  { %2342 = vmatpush3.bf16.msra.mxu1 %v2795_v10 }
 0x88d   :  { %2352 = vmatprep.subr.bf16.mxu1 %v2699_v0 }
 0x956   :  { %v475_v12 = vpop.f32.mrb[2].mxu1 }
 0x957   :  { %v476_v14 = vadd.f32 %v2817_v13, %v475_v12  ;;  %v2076_v15 = vpop.f32.mrb[3].mxu1  ;;  %v2923_v12 = vpack.c.bf16 %v946_v9, %v945_v8 }
 0x958   :  { %v947_v15 = vld [vmem:[#allocation8 + $0x10] sm:$0xff] }
 0x959   :  { %2494 = vtanh.f32 %v476_v14  ;;  %v1863_v17 = vmul.f32 -1.442695, %v476_v14 }
 0x95b   :  { %2496 = vpow2.f32 %v1863_v17 }
 0x963   :  { %v2495_v16 = vpop.eup %2494 }
 0x964   :  { %488 = vrot.lane.b32.xlu0 %v2495_v16, %s2702_s29  ;;  %v948_v16 = vld [vmem:[#allocation8 + $0x18] sm:$0xff] }
 0x965   :  { %v2497_v18 = vpop.eup %2496  ;;  %v2928_v17 = vpack.c.bf16 %v948_v16, %v947_v15 }
 0x966   :  { %v482_v19 = vadd.f32 1.0, %v2497_v18  ;;  %v949_v18 = vld [vmem:[#allocation8 + $0x20] sm:$0xff] }
 0x968   :  { %2498 = vrcp.f32 %v482_v19  ;;  %v950_v19 = vld [vmem:[#allocation8 + $0x28] sm:$0xff] }
 0x972   :  { %v2499_v20 = vpop.eup %2498 }
 0x973   :  { %v486_v23 = vmul.f32 %v2499_v20, %v387_v2 }
 0x9d6   :  { %v489_v21 = vpop.permute.xlu0 %488 }
 0x9d7   :  { %v491_v22 = vmul.f32 %v2499_v20, %v489_v21  ;;  %v951_v21 = vld [vmem:[#allocation8 + $0x30] sm:$0xff] }
 0x9d9   :  { %493 = vrot.lane.b32.xlu1 %v491_v22, %s2696_s1  ;;  %v952_v22 = vld [vmem:[#allocation8 + $0x38] sm:$0xff] }
 0xa4b   :  { %v494_v24 = vpop.permute.xlu1 %493 }
 0xa4c   :  { %v496_v25 = vadd.f32 %v494_v24, %v486_v23  ;;  %v2938_v23 = vpack.c.bf16 %v952_v22, %v951_v21 }
 0xa4e   :  { %2500 = vtanh.f32 %v496_v25 }
 0xa58   :  { %v2501_v26 = vpop.eup %2500 }
 0xa59   :  { %499 = vrot.lane.b32.xlu0 %v2501_v26, %s2702_s29 }
 0xacb   :  { %v500_v27 = vpop.permute.xlu0 %499 }
 0xacc   :  { %v2877_v28 = vmul.f32 %v2499_v20, %v500_v27  ;;  %v2934_v20 = vpack.c.bf16 %v950_v19, %v949_v18 }
 0xace   :  { %511 = vrot.lane.b32.xlu1 %v2877_v28, %s2703_s2 }
 0xb40   :  { %v512_v31 = vpop.permute.xlu1 %511 }
 0xb41   :  { %v514_v32 = vsel %vm70_vm1, %v510_v30, %v512_v31 }
 0xb42   :  { %2090 = vmatmul.mubr.msk.f32.vlgmr.msra.gmra.mrb[4].mxu0 %vm78_vm2, %v514_v32  ;;  %v2960_v32 = vld [vmem:[%s3172_s4] ss:$0 sm:$0xff]  ;;  %s2704_s4 = smov [#allocation9]  }
 0xb43   :  { %2345 = vmatpush3.bf16.msra.mxu0 %v2786_v5  ;;  %2119 = vmatprep.mubr.msk.f32.mxu0 %vm2700_vm0, %v2701_v1  ;;  %s1842_s10 = sshll.u32 %s2704_s4, 4  ;;  %s1843_s10 = int_to_ptr.vmem [resolvable:$true] %s1842_s10 }
 0xb44   :  { %2346 = vmatprep.subr.bf16.mxu0 %v2699_v0  ;;  %s2664_s11 = scalar_lea.vmem %s1843_s10, 256  ;;  %p2669_p11 = scmp.lt.s32.totalorder %s1843_s10, %s1843_s10 }
 0xb45   :  { %p2665_p10 = scmp.ne.s32.totalorder %s1843_s10, %s2664_s11  ;;  %p2670_p12 = scmp.lt.s32.totalorder %s2664_s11, %s2664_s11 }
 0xb47   :  { %2348 = vmatpush3.bf16.msra.mxu0 %v2789_v7  ;;  %p2671_p13 = por %p2670_p12, %p2669_p11 }
 0xb48   :  { %2349 = vmatprep.subr.bf16.mxu0 %v2699_v0 }
 0xb49   :  { %p2672_p0 = pnand %p2671_p13, %p2665_p10 }
 0xb4b   :  { %2351 = vmatpush3.bf16.msra.mxu0 %v2795_v10 }
 0xb4c   :  { %2361 = vmatprep.subr.bf16.mxu0 %v2699_v0 }
 0xc15   :  { %v584_v33 = vpop.f32.mrb[4].mxu0 }
 0xc16   :  { %v585_v34 = vadd.f32 %v2817_v13, %v584_v33  ;;  %v2091_v35 = vpop.f32.mrb[5].mxu0 }
 0xc18   :  { %2502 = vtanh.f32 %v585_v34  ;;  %v1865_v37 = vmul.f32 -1.442695, %v585_v34 }
 0xc1a   :  { %2504 = vpow2.f32 %v1865_v37 }
 0xc22   :  { %v2503_v36 = vpop.eup %2502 }
 0xc23   :  { %597 = vrot.lane.b32.xlu0 %v2503_v36, %s2702_s29 }
 0xc24   :  { %v2505_v38 = vpop.eup %2504 }
 0xc25   :  { %v591_v39 = vadd.f32 1.0, %v2505_v38 }
 0xc27   :  { %2506 = vrcp.f32 %v591_v39 }
 0xc31   :  { %v2507_v40 = vpop.eup %2506 }
 0xc32   :  { %v595_v43 = vmul.f32 %v2507_v40, %v496_v25 }
 0xc95   :  { %v598_v41 = vpop.permute.xlu0 %597 }
 0xc96   :  { %v600_v42 = vmul.f32 %v2507_v40, %v598_v41 }
 0xc98   :  { %602 = vrot.lane.b32.xlu1 %v600_v42, %s2696_s1 }
 0xd0a   :  { %v603_v44 = vpop.permute.xlu1 %602 }
 0xd0b   :  { %v605_v45 = vadd.f32 %v603_v44, %v595_v43 }
 0xd0d   :  { %2508 = vtanh.f32 %v605_v45 }
 0xd17   :  { %v2509_v46 = vpop.eup %2508 }
 0xd18   :  { %608 = vrot.lane.b32.xlu0 %v2509_v46, %s2702_s29 }
 0xd8a   :  { %v609_v47 = vpop.permute.xlu0 %608 }
 0xd8b   :  { %v2895_v49 = vmul.f32 %v2507_v40, %v609_v47 }
 0xd8d   :  { %620 = vrot.lane.b32.xlu1 %v2895_v49, %s2703_s2 }
 0xdff   :  { %v621_v51 = vpop.permute.xlu1 %620 }
 0xe00   :  { %v623_v52 = vsel %vm70_vm1, %v619_v50, %v621_v51 }
 0xe01   :  { %2105 = vmatmul.mubr.msk.f32.vlgmr.msra.gmra.mrb[4].mxu1 %vm78_vm2, %v623_v52 }
 0xe02   :  { %2354 = vmatpush3.bf16.msra.mxu1 %v2786_v5  ;;  %2134 = vmatprep.mubr.msk.f32.mxu1 %vm2700_vm0, %v2701_v1 }
 0xe03   :  { %2355 = vmatprep.subr.bf16.mxu1 %v2699_v0 }
 0xe06   :  { %2357 = vmatpush3.bf16.msra.mxu1 %v2789_v7 }
 0xe07   :  { %2358 = vmatprep.subr.bf16.mxu1 %v2699_v0 }
 0xe0a   :  { %2360 = vmatpush3.bf16.msra.mxu1 %v2795_v10 }
 0xe0b   :  { %2373 = vmatprep.subr.bf16.mxu1 %v2699_v0 }
 0xed4   :  { %v693_v53 = vpop.f32.mrb[4].mxu1 }
 0xed5   :  { %v694_v54 = vadd.f32 %v2817_v13, %v693_v53  ;;  %v2106_v55 = vpop.f32.mrb[5].mxu1 }
 0xed7   :  { %2510 = vtanh.f32 %v694_v54  ;;  %v1867_v5 = vmul.f32 -1.442695, %v694_v54 }
 0xed9   :  { %2512 = vpow2.f32 %v1867_v5 }
 0xee1   :  { %v2511_v56 = vpop.eup %2510 }
 0xee2   :  { %706 = vrot.lane.b32.xlu0 %v2511_v56, %s2702_s29 }
 0xee3   :  { %v2513_v57 = vpop.eup %2512 }
 0xee4   :  { %v700_v58 = vadd.f32 1.0, %v2513_v57 }
 0xee6   :  { %2514 = vrcp.f32 %v700_v58 }
 0xef0   :  { %v2515_v7 = vpop.eup %2514 }
 0xef1   :  { %v704_v10 = vmul.f32 %v2515_v7, %v605_v45 }
 0xf54   :  { %v707_v59 = vpop.permute.xlu0 %706 }
 0xf55   :  { %v709_v60 = vmul.f32 %v2515_v7, %v707_v59 }
 0xf57   :  { %711 = vrot.lane.b32.xlu1 %v709_v60, %s2696_s1 }
 0xfc9   :  { %v712_v61 = vpop.permute.xlu1 %711 }
 0xfca   :  { %v2912_v62 = vadd.f32 %v712_v61, %v704_v10  ;;  %v837_v61 = vld [vmem:[#allocation3 + $0xe] sm:$0x3] }
 0xfcc   :  { %2516 = vtanh.f32 %v2912_v62 }
 0xfd6   :  { %v2517_v63 = vpop.eup %2516 }
 0xfd7   :  { %717 = vrot.lane.b32.xlu0 %v2517_v63, %s2702_s29 }
 0xfdb   :  { %177 = vrot.lane.b32.xlu0 %v2823_v29, %s2696_s1 }
0x1049   :  { %v718_v2 = vpop.permute.xlu0 %717 }
0x104a   :  { %v2918_v3 = vmul.f32 %v2515_v7, %v718_v2 }
0x104c   :  { %729 = vrot.lane.b32.xlu1 %v2918_v3, %s2703_s2 }
0x104d   :  { %v178_v4 = vpop.permute.xlu0 %177 }
0x104e   :  { %181 = vst.msk [vmem:[#allocation2] sm:$0x3] %vm180_vm3, %v178_v4 }
0x1055   :  { %v954_v24 = vld [vmem:[#allocation2] sm:$0x3] }
0x1056   :  { %v956_v25 = vsel %vm955_vm4, %v954_v24, 0.0 }
0x10be   :  { %v730_v14 = vpop.permute.xlu1 %729 }
0x10bf   :  { %v732_v29 = vsel %vm70_vm1, %v728_v11, %v730_v14 }
0x10c0   :  { %2120 = vmatmul.mubr.msk.f32.vlgmr.msra.gmra.mrb[6].mxu0 %vm78_vm2, %v732_v29 }
0x10c1   :  { %2363 = vmatpush3.bf16.msra.mxu0 %v2923_v12  ;;  %2153 = vmatprep.mubr.msk.f32.mxu0 %vm2700_vm0, %v2701_v1 }
0x10c2   :  { %2364 = vmatprep.subr.bf16.mxu0 %v2699_v0 }
0x10c5   :  { %2366 = vmatpush3.bf16.msra.mxu0 %v2928_v17 }
0x10c6   :  { %2367 = vmatprep.subr.bf16.mxu0 %v2699_v0 }
0x10c9   :  { %2369 = vmatpush3.bf16.msra.mxu0 %v2934_v20 }
0x10ca   :  { %2370 = vmatprep.subr.bf16.mxu0 %v2699_v0 }
0x10cd   :  { %2372 = vmatpush3.bf16.msra.mxu0 %v2938_v23 }
0x10ce   :  { %2385 = vmatprep.subr.bf16.mxu0 %v2699_v0 }
0x10d0   :  { %2154 = vmatmul.mubr.msk.f32.vlgmr.msra.gmra.mrb[8].mxu0 %vm963_vm5, %v956_v25 }
0x10d1   :  { %2387 = vmatpush3.bf16.msra.mxu0 %v2923_v12  ;;  %2191 = vmatprep.mubr.msk.f32.mxu0 %vm2700_vm0, %v2701_v1 }
0x10d2   :  { %2388 = vmatprep.subr.bf16.mxu0 %v2699_v0 }
0x10d5   :  { %2390 = vmatpush3.bf16.msra.mxu0 %v2928_v17 }
0x10d6   :  { %2391 = vmatprep.subr.bf16.mxu0 %v2699_v0 }
0x10d9   :  { %2393 = vmatpush3.bf16.msra.mxu0 %v2934_v20 }
0x10da   :  { %2394 = vmatprep.subr.bf16.mxu0 %v2699_v0 }
0x10dd   :  { %2396 = vmatpush3.bf16.msra.mxu0 %v2938_v23 }
0x10de   :  { %2409 = vmatprep.subr.bf16.mxu0 %v2699_v0 }
0x1193   :  { %v802_v26 = vpop.f32.mrb[6].mxu0 }
0x1194   :  { %v803_v27 = vadd.f32 %v2817_v13, %v802_v26  ;;  %v2121_v30 = vpop.f32.mrb[7].mxu0 }
0x1196   :  { %2518 = vtanh.f32 %v803_v27  ;;  %v1869_v37 = vmul.f32 -1.442695, %v803_v27 }
0x11a0   :  { %v2519_v31 = vpop.eup %2518 }
0x11a1   :  { %815 = vrot.lane.b32.xlu1 %v2519_v31, %s2702_s29 }
0x11a3   :  { %v1033_v33 = vpop.f32.mrb[8].mxu0 }
0x11a4   :  { %v1034_v34 = vadd.f32 %v2960_v32, %v1033_v33  ;;  %v2155_v35 = vpop.f32.mrb[9].mxu0 }
0x11a6   :  { %2520 = vtanh.f32 %v1034_v34  ;;  %v1874_v39 = vmul.f32 -1.442695, %v1034_v34 }
0x11a7   :  { %2522 = vpow2.f32 %v1869_v37 }
0x11a8   :  { %2524 = vpow2.f32 %v1874_v39 }
0x11b0   :  { %v2521_v36 = vpop.eup %2520 }
0x11b1   :  { %1046 = vrot.lane.b32.xlu0 %v2521_v36, %s2702_s29  ;;  %v2523_v38 = vpop.eup %2522 }
0x11b2   :  { %v809_v40 = vadd.f32 1.0, %v2523_v38  ;;  %v2525_v41 = vpop.eup %2524 }
0x11b3   :  { %v1040_v45 = vadd.f32 1.0, %v2525_v41 }
0x11b4   :  { %2526 = vrcp.f32 %v809_v40 }
0x11b5   :  { %2528 = vrcp.f32 %v1040_v45 }
0x11be   :  { %v2527_v42 = vpop.eup %2526 }
0x11bf   :  { %v2529_v46 = vpop.eup %2528  ;;  %v813_v51 = vmul.f32 %v2527_v42, %v2912_v62 }
0x11c0   :  { %v1044_v55 = vmul.f32 0.0, %v2529_v46 }
0x1213   :  { %v816_v43 = vpop.permute.xlu1 %815 }
0x1214   :  { %v818_v44 = vmul.f32 %v2527_v42, %v816_v43 }
0x1216   :  { %820 = vrot.lane.b32.xlu1 %v818_v44, %s2696_s1 }
0x1223   :  { %v1047_v47 = vpop.permute.xlu0 %1046 }
0x1224   :  { %v1049_v50 = vmul.f32 %v2529_v46, %v1047_v47 }
0x1226   :  { %1051 = vrot.lane.b32.xlu0 %v1049_v50, %s2696_s1 }
0x1288   :  { %v821_v52 = vpop.permute.xlu1 %820 }
0x1289   :  { %v2967_v53 = vadd.f32 %v821_v52, %v813_v51 }
0x128b   :  { %2530 = vtanh.f32 %v2967_v53 }
0x1295   :  { %v2531_v54 = vpop.eup %2530 }
0x1296   :  { %826 = vrot.lane.b32.xlu1 %v2531_v54, %s2702_s29 }
0x1298   :  { %v1052_v56 = vpop.permute.xlu0 %1051 }
0x1299   :  { %v1054_v5 = vadd.f32 %v1052_v56, %v1044_v55 }
0x129b   :  { %2532 = vtanh.f32 %v1054_v5 }
0x12a5   :  { %v2533_v57 = vpop.eup %2532 }
0x12a6   :  { %1057 = vrot.lane.b32.xlu0 %v2533_v57, %s2702_s29 }
0x12aa   :  { %286 = vrot.lane.b32.xlu0 %v2841_v48, %s2696_s1 }
0x1308   :  { %v827_v58 = vpop.permute.xlu1 %826 }
0x1309   :  { %v2974_v7 = vmul.f32 %v2527_v42, %v827_v58 }
0x130b   :  { %838 = vrot.lane.b32.xlu1 %v2974_v7, %s2703_s2 }
0x1318   :  { %v1058_v59 = vpop.permute.xlu0 %1057 }
0x1319   :  { %v2978_v60 = vmul.f32 %v2529_v46, %v1058_v59 }
0x131b   :  { %1069 = vrot.lane.b32.xlu1 %v2978_v60, %s2702_s29 }
0x131c   :  { %v287_v10 = vpop.permute.xlu0 %286 }
0x131d   :  { %290 = vst.msk [vmem:[#allocation2 + $0x2] sm:$0x3] %vm180_vm3, %v287_v10 }
0x1324   :  { %v1067_v2 = vld [vmem:[#allocation2 + $0x2] sm:$0x3] }
0x137d   :  { %v839_v62 = vpop.permute.xlu1 %838 }
0x137e   :  { %v841_v63 = vsel %vm70_vm1, %v837_v61, %v839_v62 }
0x137f   :  { %2135 = vmatmul.mubr.msk.f32.vlgmr.msra.gmra.mrb[6].mxu1 %vm78_vm2, %v841_v63 }
0x1380   :  { %2375 = vmatpush3.bf16.msra.mxu1 %v2923_v12  ;;  %2172 = vmatprep.mubr.msk.f32.mxu1 %vm2700_vm0, %v2701_v1 }
0x1381   :  { %2376 = vmatprep.subr.bf16.mxu1 %v2699_v0 }
0x1384   :  { %2378 = vmatpush3.bf16.msra.mxu1 %v2928_v17 }
0x1385   :  { %2379 = vmatprep.subr.bf16.mxu1 %v2699_v0 }
0x1388   :  { %2381 = vmatpush3.bf16.msra.mxu1 %v2934_v20 }
0x1389   :  { %2382 = vmatprep.subr.bf16.mxu1 %v2699_v0 }
0x138c   :  { %2384 = vmatpush3.bf16.msra.mxu1 %v2938_v23 }
0x138d   :  { %v1070_v48 = vpop.permute.xlu1 %1069  ;;  %2397 = vmatprep.subr.bf16.mxu1 %v2699_v0 }
0x138e   :  { %v1072_v4 = vsel %vm955_vm4, %v1067_v2, %v1070_v48 }
0x138f   :  { %2173 = vmatmul.mubr.msk.f32.vlgmr.msra.gmra.mrb[8].mxu1 %vm963_vm5, %v1072_v4 }
0x1390   :  { %2399 = vmatpush3.bf16.msra.mxu1 %v2923_v12  ;;  %2210 = vmatprep.mubr.msk.f32.mxu1 %vm2700_vm0, %v2701_v1 }
0x1391   :  { %2400 = vmatprep.subr.bf16.mxu1 %v2699_v0 }
0x1394   :  { %2402 = vmatpush3.bf16.msra.mxu1 %v2928_v17 }
0x1395   :  { %2403 = vmatprep.subr.bf16.mxu1 %v2699_v0 }
0x1398   :  { %2405 = vmatpush3.bf16.msra.mxu1 %v2934_v20 }
0x1399   :  { %2406 = vmatprep.subr.bf16.mxu1 %v2699_v0 }
0x139c   :  { %2408 = vmatpush3.bf16.msra.mxu1 %v2938_v23 }
0x139d   :  { %2421 = vmatprep.subr.bf16.mxu1 %v2699_v0 }
0x1452   :  { %v3007_v8 = vpop.f32.mrb[6].mxu1 }
0x1453   :  { %v2136_v9 = vpop.f32.mrb[7].mxu1 }
0x1462   :  { %v1142_v11 = vpop.f32.mrb[8].mxu1 }
0x1463   :  { %v1143_v14 = vadd.f32 %v2960_v32, %v1142_v11  ;;  %v2174_v15 = vpop.f32.mrb[9].mxu1 }
0x1465   :  { %2534 = vtanh.f32 %v1143_v14  ;;  %v1876_v29 = vmul.f32 -1.442695, %v1143_v14 }
0x1467   :  { %2536 = vpow2.f32 %v1876_v29 }
0x146f   :  { %v2535_v16 = vpop.eup %2534 }
0x1470   :  { %1155 = vrot.lane.b32.xlu0 %v2535_v16, %s2702_s29 }
0x1471   :  { %v2537_v18 = vpop.eup %2536 }
0x1472   :  { %v1149_v19 = vadd.f32 1.0, %v2537_v18 }
0x1474   :  { %2538 = vrcp.f32 %v1149_v19 }
0x147e   :  { %v2539_v21 = vpop.eup %2538 }
0x147f   :  { %v1153_v25 = vmul.f32 %v2539_v21, %v1054_v5 }
0x14e2   :  { %v1156_v22 = vpop.permute.xlu0 %1155 }
0x14e3   :  { %v1158_v24 = vmul.f32 %v2539_v21, %v1156_v22 }
0x14e5   :  { %1160 = vrot.lane.b32.xlu1 %v1158_v24, %s2696_s1 }
0x14e9   :  { %395 = vrot.lane.b32.xlu1 %v2859_v6, %s2696_s1 }
0x1557   :  { %v1161_v26 = vpop.permute.xlu1 %1160 }
0x1558   :  { %v1163_v27 = vadd.f32 %v1161_v26, %v1153_v25 }
0x155a   :  { %2540 = vtanh.f32 %v1163_v27 }
0x155b   :  { %v396_v30 = vpop.permute.xlu1 %395 }
0x155c   :  { %399 = vst.msk [vmem:[#allocation2 + $0x4] sm:$0x3] %vm180_vm3, %v396_v30 }
0x1563   :  { %v1177_v35 = vld [vmem:[#allocation2 + $0x4] sm:$0x3] }
0x1564   :  { %v2541_v31 = vpop.eup %2540 }
0x1565   :  { %1166 = vrot.lane.b32.xlu0 %v2541_v31, %s2702_s29 }
0x15d7   :  { %v1167_v33 = vpop.permute.xlu0 %1166 }
0x15d8   :  { %v3016_v34 = vmul.f32 %v2539_v21, %v1167_v33 }
0x15da   :  { %1179 = vrot.lane.b32.xlu0 %v3016_v34, %s2702_s29 }
0x164c   :  { %v1180_v36 = vpop.permute.xlu0 %1179 }
0x164d   :  { %v1182_v6 = vsel %vm955_vm4, %v1177_v35, %v1180_v36 }
0x164e   :  { %2192 = vmatmul.mubr.msk.f32.vlgmr.msra.gmra.mrb[10].mxu0 %vm963_vm5, %v1182_v6 }
0x164f   :  { %2411 = vmatpush3.bf16.msra.mxu0 %v2923_v12  ;;  %2229 = vmatprep.mubr.msk.f32.mxu0 %vm2700_vm0, %v2701_v1 }
0x1650   :  { %2412 = vmatprep.subr.bf16.mxu0 %v2699_v0 }
0x1653   :  { %2414 = vmatpush3.bf16.msra.mxu0 %v2928_v17 }
0x1654   :  { %2415 = vmatprep.subr.bf16.mxu0 %v2699_v0 }
0x1657   :  { %2417 = vmatpush3.bf16.msra.mxu0 %v2934_v20 }
0x1658   :  { %2418 = vmatprep.subr.bf16.mxu0 %v2699_v0 }
0x165b   :  { %2420 = vmatpush3.bf16.msra.mxu0 %v2938_v23 }
0x165c   :  { %2433 = vmatprep.subr.bf16.mxu0 %v2699_v0 }
0x1721   :  { %v1252_v37 = vpop.f32.mrb[10].mxu0 }
0x1722   :  { %v1253_v38 = vadd.f32 %v2960_v32, %v1252_v37  ;;  %v2193_v39 = vpop.f32.mrb[11].mxu0 }
0x1724   :  { %2542 = vtanh.f32 %v1253_v38  ;;  %v1878_v41 = vmul.f32 -1.442695, %v1253_v38 }
0x1726   :  { %2544 = vpow2.f32 %v1878_v41 }
0x172e   :  { %v2543_v40 = vpop.eup %2542 }
0x172f   :  { %1265 = vrot.lane.b32.xlu1 %v2543_v40, %s2702_s29 }
0x1730   :  { %v2545_v42 = vpop.eup %2544 }
0x1731   :  { %v1259_v43 = vadd.f32 1.0, %v2545_v42 }
0x1733   :  { %2546 = vrcp.f32 %v1259_v43 }
0x173d   :  { %v2547_v44 = vpop.eup %2546 }
0x173e   :  { %v1263_v47 = vmul.f32 %v2547_v44, %v1163_v27 }
0x17a1   :  { %v1266_v45 = vpop.permute.xlu1 %1265 }
0x17a2   :  { %v1268_v46 = vmul.f32 %v2547_v44, %v1266_v45 }
0x17a4   :  { %1270 = vrot.lane.b32.xlu0 %v1268_v46, %s2696_s1 }
0x17a8   :  { %504 = vrot.lane.b32.xlu0 %v2877_v28, %s2696_s1 }
0x1816   :  { %v1271_v50 = vpop.permute.xlu0 %1270 }
0x1817   :  { %v1273_v51 = vadd.f32 %v1271_v50, %v1263_v47 }
0x1819   :  { %2548 = vtanh.f32 %v1273_v51 }
0x181a   :  { %v505_v52 = vpop.permute.xlu0 %504 }
0x181b   :  { %508 = vst.msk [vmem:[#allocation2 + $0x6] sm:$0x3] %vm180_vm3, %v505_v52 }
0x1822   :  { %v1287_v5 = vld [vmem:[#allocation2 + $0x6] sm:$0x3] }
0x1823   :  { %v2549_v54 = vpop.eup %2548 }
0x1824   :  { %1276 = vrot.lane.b32.xlu1 %v2549_v54, %s2702_s29 }
0x1896   :  { %v1277_v55 = vpop.permute.xlu1 %1276 }
0x1897   :  { %v3039_v56 = vmul.f32 %v2547_v44, %v1277_v55 }
0x1899   :  { %1289 = vrot.lane.b32.xlu1 %v3039_v56, %s2702_s29 }
0x190b   :  { %v1290_v57 = vpop.permute.xlu1 %1289 }
0x190c   :  { %v1292_v28 = vsel %vm955_vm4, %v1287_v5, %v1290_v57 }
0x190d   :  { %2211 = vmatmul.mubr.msk.f32.vlgmr.msra.gmra.mrb[10].mxu1 %vm963_vm5, %v1292_v28 }
0x190e   :  { %2423 = vmatpush3.bf16.msra.mxu1 %v2923_v12  ;;  %2248 = vmatprep.mubr.msk.f32.mxu1 %vm2700_vm0, %v2701_v1 }
0x190f   :  { %2424 = vmatprep.subr.bf16.mxu1 %v2699_v0 }
0x1912   :  { %2426 = vmatpush3.bf16.msra.mxu1 %v2928_v17 }
0x1913   :  { %2427 = vmatprep.subr.bf16.mxu1 %v2699_v0 }
0x1916   :  { %2429 = vmatpush3.bf16.msra.mxu1 %v2934_v20 }
0x1917   :  { %2430 = vmatprep.subr.bf16.mxu1 %v2699_v0 }
0x191a   :  { %2432 = vmatpush3.bf16.msra.mxu1 %v2938_v23 }
0x191b   :  { %2445 = vmatprep.subr.bf16.mxu1 %v2699_v0 }
0x19e0   :  { %v1362_v58 = vpop.f32.mrb[10].mxu1 }
0x19e1   :  { %v1363_v59 = vadd.f32 %v2960_v32, %v1362_v58  ;;  %v2212_v10 = vpop.f32.mrb[11].mxu1 }
0x19e3   :  { %2550 = vtanh.f32 %v1363_v59  ;;  %v1880_v62 = vmul.f32 -1.442695, %v1363_v59 }
0x19e5   :  { %2552 = vpow2.f32 %v1880_v62 }
0x19ed   :  { %v2551_v61 = vpop.eup %2550 }
0x19ee   :  { %1375 = vrot.lane.b32.xlu0 %v2551_v61, %s2702_s29 }
0x19ef   :  { %v2553_v63 = vpop.eup %2552 }
0x19f0   :  { %v1369_v48 = vadd.f32 1.0, %v2553_v63 }
0x19f2   :  { %2554 = vrcp.f32 %v1369_v48 }
0x19fc   :  { %v2555_v2 = vpop.eup %2554 }
0x19fd   :  { %v1373_v11 = vmul.f32 %v2555_v2, %v1273_v51 }
0x1a60   :  { %v1376_v4 = vpop.permute.xlu0 %1375 }
0x1a61   :  { %v1378_v9 = vmul.f32 %v2555_v2, %v1376_v4 }
0x1a63   :  { %1380 = vrot.lane.b32.xlu1 %v1378_v9, %s2696_s1 }
0x1a67   :  { %613 = vrot.lane.b32.xlu1 %v2895_v49, %s2696_s1 }
0x1ad5   :  { %v1381_v14 = vpop.permute.xlu1 %1380 }
0x1ad6   :  { %v1383_v15 = vadd.f32 %v1381_v14, %v1373_v11 }
0x1ad8   :  { %2556 = vtanh.f32 %v1383_v15 }
0x1ad9   :  { %v614_v16 = vpop.permute.xlu1 %613 }
0x1ada   :  { %617 = vst.msk [vmem:[#allocation2 + $0x8] sm:$0x3] %vm180_vm3, %v614_v16 }
0x1ae1   :  { %v1397_v21 = vld [vmem:[#allocation2 + $0x8] sm:$0x3] }
0x1ae2   :  { %v2557_v29 = vpop.eup %2556 }
0x1ae3   :  { %1386 = vrot.lane.b32.xlu0 %v2557_v29, %s2702_s29 }
0x1b55   :  { %v1387_v18 = vpop.permute.xlu0 %1386 }
0x1b56   :  { %v3062_v19 = vmul.f32 %v2555_v2, %v1387_v18 }
0x1b58   :  { %1399 = vrot.lane.b32.xlu0 %v3062_v19, %s2702_s29 }
0x1bca   :  { %v1400_v22 = vpop.permute.xlu0 %1399 }
0x1bcb   :  { %v1402_v49 = vsel %vm955_vm4, %v1397_v21, %v1400_v22 }
0x1bcc   :  { %2230 = vmatmul.mubr.msk.f32.vlgmr.msra.gmra.mrb[12].mxu0 %vm963_vm5, %v1402_v49 }
0x1bcd   :  { %2435 = vmatpush3.bf16.msra.mxu0 %v2923_v12  ;;  %2267 = vmatprep.mubr.msk.f32.mxu0 %vm2700_vm0, %v2701_v1 }
0x1bce   :  { %2436 = vmatprep.subr.bf16.mxu0 %v2699_v0 }
0x1bd1   :  { %2438 = vmatpush3.bf16.msra.mxu0 %v2928_v17 }
0x1bd2   :  { %2439 = vmatprep.subr.bf16.mxu0 %v2699_v0 }
0x1bd5   :  { %2441 = vmatpush3.bf16.msra.mxu0 %v2934_v20 }
0x1bd6   :  { %2442 = vmatprep.subr.bf16.mxu0 %v2699_v0 }
0x1bd9   :  { %2444 = vmatpush3.bf16.msra.mxu0 %v2938_v23 }
0x1c9f   :  { %v1472_v24 = vpop.f32.mrb[12].mxu0 }
0x1ca0   :  { %v1473_v25 = vadd.f32 %v2960_v32, %v1472_v24  ;;  %v2231_v26 = vpop.f32.mrb[13].mxu0 }
0x1ca2   :  { %2558 = vtanh.f32 %v1473_v25  ;;  %v1882_v30 = vmul.f32 -1.442695, %v1473_v25 }
0x1ca4   :  { %2560 = vpow2.f32 %v1882_v30 }
0x1cac   :  { %v2559_v27 = vpop.eup %2558 }
0x1cad   :  { %1485 = vrot.lane.b32.xlu1 %v2559_v27, %s2702_s29 }
0x1cae   :  { %v2561_v31 = vpop.eup %2560 }
0x1caf   :  { %v1479_v33 = vadd.f32 1.0, %v2561_v31 }
0x1cb1   :  { %2562 = vrcp.f32 %v1479_v33 }
0x1cbb   :  { %v2563_v35 = vpop.eup %2562 }
0x1cbc   :  { %v1483_v37 = vmul.f32 %v2563_v35, %v1383_v15 }
0x1d1f   :  { %v1486_v36 = vpop.permute.xlu1 %1485 }
0x1d20   :  { %v1488_v6 = vmul.f32 %v2563_v35, %v1486_v36 }
0x1d22   :  { %1490 = vrot.lane.b32.xlu0 %v1488_v6, %s2696_s1 }
0x1d26   :  { %722 = vrot.lane.b32.xlu0 %v2918_v3, %s2696_s1 }
0x1d94   :  { %v1491_v38 = vpop.permute.xlu0 %1490 }
0x1d95   :  { %v1493_v39 = vadd.f32 %v1491_v38, %v1483_v37 }
0x1d97   :  { %2564 = vtanh.f32 %v1493_v39 }
0x1d98   :  { %v723_v40 = vpop.permute.xlu0 %722 }
0x1d99   :  { %726 = vst.msk [vmem:[#allocation2 + $0xa] sm:$0x3] %vm180_vm3, %v723_v40 }
0x1da0   :  { %v1507_v44 = vld [vmem:[#allocation2 + $0xa] sm:$0x3] }
0x1da1   :  { %v2565_v41 = vpop.eup %2564 }
0x1da2   :  { %1496 = vrot.lane.b32.xlu1 %v2565_v41, %s2702_s29 }
0x1e14   :  { %v1497_v42 = vpop.permute.xlu1 %1496 }
0x1e15   :  { %v3084_v43 = vmul.f32 %v2563_v35, %v1497_v42 }
0x1e17   :  { %1509 = vrot.lane.b32.xlu1 %v3084_v43, %s2702_s29 }
0x1e89   :  { %v1510_v45 = vpop.permute.xlu1 %1509 }
0x1e8a   :  { %v1512_v3 = vsel %vm955_vm4, %v1507_v44, %v1510_v45 }
0x1e8b   :  { %2249 = vmatmul.mubr.msk.f32.vlgmr.msra.gmra.mrb[12].mxu1 %vm963_vm5, %v1512_v3 }
0x1e8c   :  { %2447 = vmatpush3.bf16.msra.mxu1 %v2923_v12  ;;  %2286 = vmatprep.mubr.msk.f32.mxu1 %vm2700_vm0, %v2701_v1 }
0x1e8d   :  { %2448 = vmatprep.subr.bf16.mxu1 %v2699_v0 }
0x1e90   :  { %2450 = vmatpush3.bf16.msra.mxu1 %v2928_v17 }
0x1e91   :  { %2451 = vmatprep.subr.bf16.mxu1 %v2699_v0 }
0x1e94   :  { %2453 = vmatpush3.bf16.msra.mxu1 %v2934_v20  ;;  %v912_v20 = vadd.f32 %v2817_v13, %v3007_v8 }
0x1e95   :  { %2454 = vmatprep.subr.bf16.mxu1 %v2699_v0 }
0x1e96   :  { %v1871_v55 = vmul.f32 -1.442695, %v912_v20 }
0x1e98   :  { %2456 = vmatpush3.bf16.msra.mxu1 %v2938_v23 }
0x1f5e   :  { %v1582_v46 = vpop.f32.mrb[12].mxu1 }
0x1f5f   :  { %v1583_v47 = vadd.f32 %v2960_v32, %v1582_v46  ;;  %v2250_v50 = vpop.f32.mrb[13].mxu1 }
0x1f61   :  { %2566 = vtanh.f32 %v1583_v47  ;;  %v1884_v1 = vmul.f32 -1.442695, %v1583_v47 }
0x1f63   :  { %2568 = vpow2.f32 %v1884_v1 }
0x1f6b   :  { %v2567_v12 = vpop.eup %2566 }
0x1f6c   :  { %1595 = vrot.lane.b32.xlu0 %v2567_v12, %s2702_s29 }
0x1f6d   :  { %v2569_v51 = vpop.eup %2568 }
0x1f6e   :  { %v1589_v17 = vadd.f32 1.0, %v2569_v51 }
0x1f70   :  { %2570 = vrcp.f32 %v1589_v17  ;;  %v1061_v17 = vmax.f32 %v2978_v60, 0.0 }
0x1f71   :  { %2572 = vtanh.f32 %v912_v20  ;;  %v1500_v20 = vmax.f32 %v3084_v43, 0.0 }
0x1f72   :  { %2574 = vpow2.f32 %v1871_v55 }
0x1f7a   :  { %v2571_v52 = vpop.eup %2570 }
0x1f7b   :  { %v2573_v54 = vpop.eup %2572  ;;  %v1593_v28 = vmul.f32 %v2571_v52, %v1493_v39 }
0x1f7c   :  { %v2575_v5 = vpop.eup %2574 }
0x1f7d   :  { %v918_v57 = vadd.f32 1.0, %v2575_v5 }
0x1f7f   :  { %2576 = vrcp.f32 %v918_v57  ;;  %v1170_v57 = vmax.f32 %v3016_v34, 0.0 }
0x1f89   :  { %v2577_v59 = vpop.eup %2576 }
0x1f8a   :  { %v922_v62 = vmul.f32 %v2577_v59, %v2967_v53 }
0x1fde   :  { %v1596_v0 = vpop.permute.xlu0 %1595 }
0x1fdf   :  { %v1598_v23 = vmul.f32 %v2571_v52, %v1596_v0 }
0x1fe1   :  { %1600 = vrot.lane.b32.xlu1 %v1598_v23, %s2696_s1 }
0x1fe5   :  { %831 = vrot.lane.b32.xlu1 %v2974_v7, %s2696_s1 }
0x1fe9   :  { %924 = vrot.lane.b32.xlu1 %v2573_v54, %s2702_s29 }
0x2053   :  { %v1601_v58 = vpop.permute.xlu1 %1600 }
0x2054   :  { %v1603_v13 = vadd.f32 %v1601_v58, %v1593_v28  ;;  %v1390_v28 = vmax.f32 %v3062_v19, 0.0 }
0x2056   :  { %2578 = vtanh.f32 %v1603_v13 }
0x2057   :  { %v832_v8 = vpop.permute.xlu1 %831 }
0x2058   :  { %835 = vst.msk [vmem:[#allocation2 + $0xc] sm:$0x3] %vm180_vm3, %v832_v8 }
0x205b   :  { %v925_v10 = vpop.permute.xlu1 %924 }
0x205c   :  { %v927_v61 = vmul.f32 %v2577_v59, %v925_v10 }
0x205e   :  { %929 = vrot.lane.b32.xlu1 %v927_v61, %s2696_s1 }
0x205f   :  { %v1617_v11 = vld [vmem:[#allocation2 + $0xc] sm:$0x3] }
0x2060   :  { %v2579_v7 = vpop.eup %2578 }
0x2061   :  { %1606 = vrot.lane.b32.xlu0 %v2579_v7, %s2702_s29 }
0x20d0   :  { %v930_v63 = vpop.permute.xlu1 %929 }
0x20d1   :  { %v932_v48 = vadd.f32 %v930_v63, %v922_v62 }
0x20d3   :  { %2580 = vtanh.f32 %v932_v48  ;;  %v1607_v2 = vpop.permute.xlu0 %1606 }
0x20d4   :  { %v3111_v4 = vmul.f32 %v2571_v52, %v1607_v2 }
0x20d6   :  { %1619 = vrot.lane.b32.xlu0 %v3111_v4, %s2702_s29  ;;  %v1610_v58 = vmax.f32 %v3111_v4, 0.0 }
0x20dd   :  { %v2581_v9 = vpop.eup %2580 }
0x20de   :  { %935 = vrot.lane.b32.xlu1 %v2581_v9, %s2702_s29 }
0x2148   :  { %v1620_v14 = vpop.permute.xlu0 %1619 }
0x2149   :  { %v1622_v15 = vsel %vm955_vm4, %v1617_v11, %v1620_v14 }
0x214a   :  { %2268 = vmatmul.mubr.msk.f32.vlgmr.msra.gmra.mrb[14].mxu0 %vm963_vm5, %v1622_v15 }
0x2150   :  { %v936_v16 = vpop.permute.xlu1 %935 }
0x2151   :  { %v938_v53 = vmul.f32 %v2577_v59, %v936_v16 }
0x2153   :  { %940 = vrot.lane.b32.xlu1 %v938_v53, %s2696_s1 }
0x21c5   :  { %v941_v29 = vpop.permute.xlu1 %940 }
0x21c6   :  { %944 = vst.msk [vmem:[#allocation2 + $0xe] sm:$0x3] %vm180_vm3, %v941_v29 }
0x21cd   :  { %v1727_v39 = vld [vmem:[#allocation2 + $0xe] sm:$0x3] }
0x221d   :  { %v1692_v18 = vpop.f32.mrb[14].mxu0 }
0x221e   :  { %v1693_v21 = vadd.f32 %v2960_v32, %v1692_v18  ;;  %v2269_v22 = vpop.f32.mrb[15].mxu0 }
0x2220   :  { %2582 = vtanh.f32 %v1693_v21  ;;  %v1886_v24 = vmul.f32 -1.442695, %v1693_v21 }
0x2222   :  { %2584 = vpow2.f32 %v1886_v24 }
0x222a   :  { %v2583_v49 = vpop.eup %2582 }
0x222b   :  { %1705 = vrot.lane.b32.xlu0 %v2583_v49, %s2702_s29 }
0x222c   :  { %v2585_v25 = vpop.eup %2584 }
0x222d   :  { %v1699_v26 = vadd.f32 1.0, %v2585_v25 }
0x222f   :  { %2586 = vrcp.f32 %v1699_v26 }
0x2239   :  { %v2587_v27 = vpop.eup %2586 }
0x223a   :  { %v1703_v33 = vmul.f32 %v2587_v27, %v1603_v13 }
0x229d   :  { %v1706_v30 = vpop.permute.xlu0 %1705 }
0x229e   :  { %v1708_v31 = vmul.f32 %v2587_v27, %v1706_v30 }
0x22a0   :  { %1710 = vrot.lane.b32.xlu0 %v1708_v31, %s2696_s1 }
0x2312   :  { %v1711_v35 = vpop.permute.xlu0 %1710 }
0x2313   :  { %v1713_v36 = vadd.f32 %v1711_v35, %v1703_v33 }
0x2315   :  { %2588 = vtanh.f32 %v1713_v36 }
0x231f   :  { %v2589_v6 = vpop.eup %2588 }
0x2320   :  { %1716 = vrot.lane.b32.xlu0 %v2589_v6, %s2702_s29 }
0x2392   :  { %v1717_v37 = vpop.permute.xlu0 %1716 }
0x2393   :  { %v1719_v38 = vmul.f32 %v2587_v27, %v1717_v37 }
0x2395   :  { %1729 = vrot.lane.b32.xlu0 %v1719_v38, %s2702_s29  ;;  %v1720_v52 = vmax.f32 %v1719_v38, 0.0 }
0x2407   :  { %v1730_v40 = vpop.permute.xlu0 %1729 }
0x2408   :  { %v1732_v41 = vsel %vm955_vm4, %v1727_v39, %v1730_v40 }
0x2409   :  { %2287 = vmatmul.mubr.msk.f32.vlgmr.msra.gmra.mrb[14].mxu1 %vm963_vm5, %v1732_v41 }
0x24dc   :  { %v1802_v42 = vpop.f32.mrb[14].mxu1 }
0x24dd   :  { %v1803_v44 = vadd.f32 %v2960_v32, %v1802_v42  ;;  %v2288_v45 = vpop.f32.mrb[15].mxu1  ;;  %v1280_v32 = vmax.f32 %v3039_v56, 0.0 }
0x24df   :  { %2590 = vtanh.f32 %v1803_v44  ;;  %v1888_v46 = vmul.f32 -1.442695, %v1803_v44 }
0x24e1   :  { %2592 = vpow2.f32 %v1888_v46 }
0x24e9   :  { %v2591_v3 = vpop.eup %2590 }
0x24ea   :  { %1815 = vrot.lane.b32.xlu1 %v2591_v3, %s2702_s29 }
0x24eb   :  { %v2593_v47 = vpop.eup %2592 }
0x24ec   :  { %v1809_v50 = vadd.f32 1.0, %v2593_v47 }
0x24ee   :  { %2594 = vrcp.f32 %v1809_v50 }
0x24f8   :  { %v2595_v12 = vpop.eup %2594 }
0x24f9   :  { %v1813_v0 = vmul.f32 %v2595_v12, %v1713_v36 }
0x255c   :  { %v1816_v1 = vpop.permute.xlu1 %1815 }
0x255d   :  { %v1818_v51 = vmul.f32 %v2595_v12, %v1816_v1 }
0x255f   :  { %1820 = vrot.lane.b32.xlu0 %v1818_v51, %s2696_s1 }
0x2563   :  { %1063 = vrot.lane.b32.xlu0 %v1061_v17, %s2696_s1 }
0x2567   :  { %1282 = vrot.lane.b32.xlu0 %v1280_v32, %s2696_s1 }
0x256b   :  { %1502 = vrot.lane.b32.xlu0 %v1500_v20, %s2696_s1 }
0x256f   :  { %1722 = vrot.lane.b32.xlu0 %v1720_v52, %s2696_s1 }
0x25d1   :  { %v1821_v23 = vpop.permute.xlu0 %1820 }
0x25d2   :  { %v1823_v54 = vadd.f32 %v1821_v23, %v1813_v0 }
0x25d4   :  { %2596 = vtanh.f32 %v1823_v54 }
0x25d5   :  { %v1064_v55 = vpop.permute.xlu0 %1063 }
0x25d6   :  { %1066 = vst.msk [vmem:[#allocation9] sm:$0x3] %vm180_vm3, %v1064_v55 }
0x25d9   :  { %v1283_v60 = vpop.permute.xlu0 %1282 }
0x25da   :  { %1286 = vst.msk [vmem:[#allocation9 + $0x4] sm:$0x3] %vm180_vm3, %v1283_v60 }
0x25dd   :  { %v1503_v56 = vpop.permute.xlu0 %1502 }
0x25de   :  { %v2597_v5 = vpop.eup %2596  ;;  %1506 = vst.msk [vmem:[#allocation9 + $0x8] sm:$0x3] %vm180_vm3, %v1503_v56 }
0x25df   :  { %1826 = vrot.lane.b32.xlu1 %v2597_v5, %s2702_s29 }
0x25e1   :  { %v1723_v43 = vpop.permute.xlu0 %1722 }
0x25e2   :  { %1726 = vst.msk [vmem:[#allocation9 + $0xc] sm:$0x3] %vm180_vm3, %v1723_v43 }
0x25e3   :  { %1172 = vrot.lane.b32.xlu1 %v1170_v57, %s2696_s1 }
0x25e7   :  { %1392 = vrot.lane.b32.xlu1 %v1390_v28, %s2696_s1 }
0x25eb   :  { %1612 = vrot.lane.b32.xlu1 %v1610_v58, %s2696_s1 }
0x2651   :  { %v1827_v13 = vpop.permute.xlu1 %1826 }
0x2652   :  { %v1829_v8 = vmul.f32 %v2595_v12, %v1827_v13 }
0x2654   :  { %v1830_v59 = vmax.f32 %v1829_v8, 0.0 }
0x2655   :  { %v1173_v10 = vpop.permute.xlu1 %1172 }
0x2656   :  { %1176 = vst.msk [vmem:[#allocation9 + $0x2] sm:$0x3] %vm180_vm3, %v1173_v10  ;;  %1832 = vrot.lane.b32.xlu1 %v1830_v59, %s2696_s1 }
0x2659   :  { %v1393_v34 = vpop.permute.xlu1 %1392 }
0x265a   :  { %1396 = vst.msk [vmem:[#allocation9 + $0x6] sm:$0x3] %vm180_vm3, %v1393_v34 }
0x265d   :  { %v1613_v61 = vpop.permute.xlu1 %1612 }
0x265e   :  { %1616 = vst.msk [vmem:[#allocation9 + $0xa] sm:$0x3] %vm180_vm3, %v1613_v61 }
0x26c8   :  { %v1833_v19 = vpop.permute.xlu1 %1832 }
0x26c9   :  { %1836 = vst.msk [vmem:[#allocation9 + $0xe] sm:$0x3] %vm180_vm3, %v1833_v19 }
0x26ca   :  { %2675 = shalt.err (!%p2672_p0)
}
0x26cb   :  { %s2676_s14 = scalar_lea.hbm %s3173_s5, 256 }
0x26cc   :  { %p2677_p1 = scmp.ne.s32.totalorder %s3173_s5, %s2676_s14  ;;  %p2680_p2 = scmp.lt.u32.totalorder %s2676_s14, %s3173_s5 }
0x26ce   :  { %p2682_p3 = pnand %p2680_p2, %p2677_p1 }
0x26d0   :  { %2685 = shalt.err (!%p2682_p3)
}
0x26d1   :  { %1848 = dma.vmem_to_hbm [thread:$0]  %s1843_s10, 256, %s3173_s5, [#allocation5], %s2696_s1, %s2696_s1, %s2697_s17  }
0x26d2   :  { %2690 = dma.done.wait [#allocation5], 256  }
0x26d3   :  { %2691 = vsyncadd [#allocation5], 4294967040 }
0x26d4   :  { %1852 = vsyncpa [#allocation4], 1 }
0x26d5   :  { %1853 = vsyncpa [#allocation7], 1 }
0x26d6   :  { %1854 = vsyncpa [#allocation5], 1 }

</bundles_post_ra>
